<compile_context>
chip_gen: v6e
topology: v6e:2x2x1
jax: 0.10.0
libtpu: 0.0.40
codegen_flags: <defaults>
</compile_context>

<pallas_src>
import functools

import jax
import jax.numpy as jnp
from jax.experimental import pallas as pl
from jax.experimental.pallas import tpu as pltpu


# ----------------------------- fused Pallas kernel --------------------------

def _fused_gcn_kernel(a_ref, x_ref, *rest, num_layers, has_bias, skip_coef):
    """Entire forward for ONE graph (one grid step), VMEM-resident.

    rest = (W_0..W_{L-1},
            b_j for every layer j with has_bias[j],
            scale_0..scale_{L-3}, shift_0..shift_{L-3},
            o_ref)

    GCNConv: h <- A_hat @ (h @ W) [+ b]   (two MXU matmuls, bf16 in / f32 acc)
    Hidden layers (pre-activation): h <- conv_i( relu(h*scale + shift) ),
    with h <- h + skip_coef * h_skip every second hidden layer.
    """
    L = num_layers
    n_bn = L - 2
    nb = sum(has_bias)
    w_refs = rest[0:L]
    b_iter = iter(rest[L:L + nb])
    b_refs = [next(b_iter) if hb else None for hb in has_bias]
    s_refs = rest[L + nb:L + nb + n_bn]
    t_refs = rest[L + nb + n_bn:L + nb + 2 * n_bn]
    o_ref = rest[L + nb + 2 * n_bn]

    a = a_ref[0]                                    # (N, N) bf16, pre-cast on host
    x = x_ref[0]                                    # (N, C_PAD) bf16, pre-cast on host

    def conv(h_bf16, w_ref, b_ref):                 # A_hat @ (h @ W) [+ b]
        hw = jnp.dot(h_bf16, w_ref[...], preferred_element_type=jnp.float32)
        out = jnp.dot(a, hw.astype(jnp.bfloat16), preferred_element_type=jnp.float32)
        if b_ref is not None:                       # bias only where not folded
            out = out + b_ref[...]
        return out

    h = conv(x, w_refs[0], b_refs[0])               # f32
    h_skip = h                                      # skip uses the PRE-BN activation
    # TODO(synk): at larger N / deeper L, keep h / h_skip in VMEM scratch refs
    # (scratch_shapes) instead of unrolled loop-carried values to bound vreg
    # live ranges.
    for i in range(1, L - 1):
        # pre-activation: folded eval-mode BN affine, then ReLU (f32 VPU math)
        h = jnp.maximum(h * s_refs[i - 1][...] + t_refs[i - 1][...], 0.0)
        # TODO(synk): F.dropout is identity in inference; training-mode
        # stochastic dropout (pltpu.prng_*) not implemented.
        h = conv(h.astype(jnp.bfloat16), w_refs[i], b_refs[i])
        if i % 2 == 0:
            h = h + skip_coef * h_skip
            h_skip = h
    o_ref[0] = conv(h.astype(jnp.bfloat16), w_refs[-1], b_refs[-1])


# ----------------------------- wrapper --------------------------------------

def _batched_spec(shape):
    """Block = one graph (leading axis indexed by the grid); shape bound now."""
    nd = len(shape)
    return pl.BlockSpec((1,) + tuple(shape[1:]),
                        lambda b, _nd=nd: (b,) + (0,) * (_nd - 1))


def _resident_spec(shape):
    """Whole-array block, same block every grid step (stays VMEM-resident)."""
    zeros = (0,) * len(shape)
    return pl.BlockSpec(tuple(shape), lambda b, _z=zeros: _z)


def gcn_forward_fused(a_hat_b16, x_pad_b16, ws_pad, bs_pad, scales, shifts, *,
                      skip_coef, has_bias):
    """Single pallas_call; grid over graphs (parallel), weights resident."""
    B, n, c_pad = x_pad_b16.shape
    num_layers = len(ws_pad)
    biases_used = [bp for bp, hb in zip(bs_pad, has_bias) if hb]
    operands = [a_hat_b16, x_pad_b16, *ws_pad, *biases_used, *scales, *shifts]

    in_specs = [_batched_spec(a_hat_b16.shape), _batched_spec(x_pad_b16.shape)]
    in_specs += [_resident_spec(op.shape) for op in operands[2:]]

    return pl.pallas_call(
        functools.partial(_fused_gcn_kernel, num_layers=num_layers,
                          has_bias=tuple(has_bias), skip_coef=skip_coef),
        out_shape=jax.ShapeDtypeStruct((B, n, c_pad), jnp.float32),
        grid=(B,),
        in_specs=in_specs,
        out_specs=_batched_spec((B, n, c_pad)),
        compiler_params=pltpu.CompilerParams(
            dimension_semantics=("parallel",),     # v7x: one graph per TensorCore
            vmem_limit_bytes=32 * 1024 * 1024,     # explicit budget; >> actual use
        ),
    )(*operands)


# ----------------------------- glue (plain JAX, host side) ------------------

def normalized_adjacency(edge_index, num_nodes):
    """Dense GCN-normalized adjacency with self-loops (PyG gcn_norm), f32."""
    src, dst = edge_index[0], edge_index[1]
    loop = jnp.arange(num_nodes)
    src = jnp.concatenate([src, loop])
    dst = jnp.concatenate([dst, loop])
    a = jnp.zeros((num_nodes, num_nodes), jnp.float32).at[dst, src].add(1.0)
    deg = jnp.sum(a, axis=1)
    d = jax.lax.rsqrt(jnp.maximum(deg, 1e-12))
    return a * d[:, None] * d[None, :]


def glorot(key, fan_in, fan_out):
    lim = jnp.sqrt(6.0 / (fan_in + fan_out))
    return jax.random.uniform(key, (fan_in, fan_out), jnp.float32, -lim, lim)


def _pad2(a, rows, cols, fill=0.0):
    out = jnp.full((rows, cols), fill, a.dtype)
    return out.at[:a.shape[0], :a.shape[1]].set(a)


def reference_forward(a_hat, x, Ws, bs, gammas, betas, means, vars_, skip_coef, eps):
    """Pure-f32 JAX replica of the PyTorch module (eval mode), one graph."""
    def conv(h, W, b):
        return a_hat @ (h @ W) + b
    L = len(Ws)
    h = conv(x, Ws[0], bs[0])
    h_skip = h
    for i in range(1, L - 1):
        sc = gammas[i - 1] * jax.lax.rsqrt(vars_[i - 1] + eps)
        h = (h - means[i - 1]) * sc + betas[i - 1]
        h = jnp.maximum(h, 0.0)
        h = conv(h, Ws[i], bs[i])
        if i % 2 == 0:
            h = h + skip_coef * h_skip
            h_skip = h
    return conv(h, Ws[-1], bs[-1])


# ----------------------------- main ------------------------------------------

if __name__ == "__main__":
    B = 2                   # graphs per batch -> grid=(B,), one per TC on v7x
    N_NODES = 128           # nodes per graph: fills v5e MXU rows (use 256 on v6e/v7x)
    IN_C, HID, OUT_C = 4, 32, 8
    NUM_LAYERS = 4          # conv dims: IN->HID, HID->HID, HID->HID, HID->OUT
    DROPOUT = 0.5           # inference mode -> identity
    SKIP_COEF = 0.5
    BN_EPS = 1e-5
    C_PAD = 128             # lane-dense channel padding

    key = jax.random.PRNGKey(0)
    keys = jax.random.split(key, NUM_LAYERS + 8)

    # node features, one set per graph
    x = jax.random.normal(keys[0], (B, N_NODES, IN_C), jnp.float32)

    # per-graph ring graphs (graph b connects i <-> (i + b + 1) mod N)
    a_hats = []
    for b in range(B):
        s = jnp.arange(N_NODES)
        d = (s + b + 1) % N_NODES
        edge_index = jnp.stack(
            [jnp.concatenate([s, d]), jnp.concatenate([d, s])]).astype(jnp.int32)
        a_hats.append(normalized_adjacency(edge_index, N_NODES))
    a_hat_f32 = jnp.stack(a_hats)                       # (B, N, N) f32

    # GCNConv parameters (weight (C_in, C_out), bias (C_out)) -- non-zero bias
    # so the host-side bias folding is actually exercised.
    dims = [IN_C] + [HID] * (NUM_LAYERS - 1) + [OUT_C]
    Ws = [glorot(keys[1 + i], dims[i], dims[i + 1]) for i in range(NUM_LAYERS)]
    bs = [0.05 * jax.random.normal(keys[1 + NUM_LAYERS], (dims[i + 1],), jnp.float32)
          for i in range(NUM_LAYERS)]

    # BatchNorm1d (eval mode) with non-trivial running stats / affine params.
    n_bn = NUM_LAYERS - 2
    gammas = [1.0 + 0.1 * jax.random.normal(keys[2 + NUM_LAYERS + j], (HID,), jnp.float32)
              for j in range(n_bn)]
    betas = [0.05 * jax.random.normal(keys[4 + NUM_LAYERS + j], (HID,), jnp.float32)
             for j in range(n_bn)]
    run_means = [0.1 * jax.random.normal(keys[6 + NUM_LAYERS + j], (HID,), jnp.float32)
                 for j in range(n_bn)]
    run_vars = [1.0 + 0.2 * jax.random.uniform(keys[7 + NUM_LAYERS], (HID,), jnp.float32)
                for _ in range(n_bn)]

    # ---- host-side padding / casting / folding (outside the kernel) ----
    a_hat_b16 = a_hat_f32.astype(jnp.bfloat16)                      # pre-cast A_hat
    x_pad = jnp.zeros((B, N_NODES, C_PAD), jnp.float32).at[:, :, :IN_C].set(x)
    x_pad_b16 = x_pad.astype(jnp.bfloat16)                          # pre-cast x
    ws_pad = [_pad2(w, C_PAD, C_PAD).astype(jnp.bfloat16) for w in Ws]
    bs_pad = [_pad2(b.reshape(1, -1), 1, C_PAD) for b in bs]

    # Fold eval-mode BN to (scale, shift); fold conv_j bias into shift_j when
    # conv_j's output is NOT captured as the skip tensor (odd j).
    has_bias = [True] * NUM_LAYERS
    scales, shifts = [], []
    for j in range(n_bn):
        sc = gammas[j] * jax.lax.rsqrt(run_vars[j] + BN_EPS)
        sh = betas[j] - run_means[j] * sc
        if j % 2 == 1:                      # conv_j output feeds only this BN
            sh = sh + bs[j] * sc
            has_bias[j] = False
        scales.append(_pad2(sc.reshape(1, -1), 1, C_PAD, fill=1.0))
        shifts.append(_pad2(sh.reshape(1, -1), 1, C_PAD, fill=0.0))

    @jax.jit
    def forward(a_hat_b16, x_pad_b16, ws_pad, bs_pad, scales, shifts):
        out_pad = gcn_forward_fused(a_hat_b16, x_pad_b16, ws_pad, bs_pad,
                                    scales, shifts,
                                    skip_coef=SKIP_COEF, has_bias=has_bias)
        return out_pad[:, :, :OUT_C]        # strip lane padding outside the kernel

    out = forward(a_hat_b16, x_pad_b16, ws_pad, bs_pad, scales, shifts)
    jax.block_until_ready(out)
    assert out.shape == (B, N_NODES, OUT_C)

    # Sanity check against the pure-f32 module semantics (loose tol: kernel
    # uses bf16 matmul operands).
    ref = jnp.stack([reference_forward(a_hat_f32[b], x[b], Ws, bs, gammas, betas,
                                       run_means, run_vars, SKIP_COEF, BN_EPS)
                     for b in range(B)])
    max_err = float(jnp.max(jnp.abs(out - ref)))
    assert max_err < 5e-2 * (1.0 + float(jnp.max(jnp.abs(ref)))), max_err

    print("KERNEL_OK")
</pallas_src>

<mosaic_0001>
module attributes {stable_mosaic.version = 11 : i64} {
  func.func @_fused_gcn_kernel(%arg0: i32, %arg1: memref<1x128x128xbf16, #tpu.memory_space<vmem>>, %arg2: memref<1x128x128xbf16, #tpu.memory_space<vmem>>, %arg3: memref<128x128xbf16, #tpu.memory_space<vmem>>, %arg4: memref<128x128xbf16, #tpu.memory_space<vmem>>, %arg5: memref<128x128xbf16, #tpu.memory_space<vmem>>, %arg6: memref<128x128xbf16, #tpu.memory_space<vmem>>, %arg7: memref<1x128xf32, #tpu.memory_space<vmem>>, %arg8: memref<1x128xf32, #tpu.memory_space<vmem>>, %arg9: memref<1x128xf32, #tpu.memory_space<vmem>>, %arg10: memref<1x128xf32, #tpu.memory_space<vmem>>, %arg11: memref<1x128xf32, #tpu.memory_space<vmem>>, %arg12: memref<1x128xf32, #tpu.memory_space<vmem>>, %arg13: memref<1x128xf32, #tpu.memory_space<vmem>>, %arg14: memref<1x128x128xf32, #tpu.memory_space<vmem>>) attributes {dimension_semantics = [#tpu.dimension_semantics<parallel>], iteration_bounds = array<i64: 2>, scalar_prefetch = 0 : i64, scratch_operands = 0 : i64, tpu.core_type = #tpu.core_type<tc>, window_params = [{transform_indices = @transform_0, window_bounds = array<i64: 1, 128, 128>}, {transform_indices = @transform_1, window_bounds = array<i64: 1, 128, 128>}, {pipeline_mode = #tpu.pipeline_mode<synchronous>, transform_indices = @transform_2, window_bounds = array<i64: 128, 128>}, {pipeline_mode = #tpu.pipeline_mode<synchronous>, transform_indices = @transform_3, window_bounds = array<i64: 128, 128>}, {pipeline_mode = #tpu.pipeline_mode<synchronous>, transform_indices = @transform_4, window_bounds = array<i64: 128, 128>}, {pipeline_mode = #tpu.pipeline_mode<synchronous>, transform_indices = @transform_5, window_bounds = array<i64: 128, 128>}, {pipeline_mode = #tpu.pipeline_mode<synchronous>, transform_indices = @transform_6, window_bounds = array<i64: 1, 128>}, {pipeline_mode = #tpu.pipeline_mode<synchronous>, transform_indices = @transform_7, window_bounds = array<i64: 1, 128>}, {pipeline_mode = #tpu.pipeline_mode<synchronous>, transform_indices = @transform_8, window_bounds = array<i64: 1, 128>}, {pipeline_mode = #tpu.pipeline_mode<synchronous>, transform_indices = @transform_9, window_bounds = array<i64: 1, 128>}, {pipeline_mode = #tpu.pipeline_mode<synchronous>, transform_indices = @transform_10, window_bounds = array<i64: 1, 128>}, {pipeline_mode = #tpu.pipeline_mode<synchronous>, transform_indices = @transform_11, window_bounds = array<i64: 1, 128>}, {pipeline_mode = #tpu.pipeline_mode<synchronous>, transform_indices = @transform_12, window_bounds = array<i64: 1, 128>}, {transform_indices = @transform_13, window_bounds = array<i64: 1, 128, 128>}]} {
    %c0 = arith.constant 0 : index
    %c0_0 = arith.constant 0 : index
    %c0_1 = arith.constant 0 : index
    %0 = vector.load %arg1[%c0, %c0_0, %c0_1] : memref<1x128x128xbf16, #tpu.memory_space<vmem>>, vector<1x128x128xbf16>
    %1 = vector.shape_cast %0 : vector<1x128x128xbf16> to vector<128x128xbf16>
    %c0_2 = arith.constant 0 : index
    %c0_3 = arith.constant 0 : index
    %c0_4 = arith.constant 0 : index
    %2 = vector.load %arg2[%c0_2, %c0_3, %c0_4] : memref<1x128x128xbf16, #tpu.memory_space<vmem>>, vector<1x128x128xbf16>
    %3 = vector.shape_cast %2 : vector<1x128x128xbf16> to vector<128x128xbf16>
    %c0_5 = arith.constant 0 : index
    %c0_6 = arith.constant 0 : index
    %4 = vector.load %arg3[%c0_5, %c0_6] : memref<128x128xbf16, #tpu.memory_space<vmem>>, vector<128x128xbf16>
    %cst = arith.constant dense<0.000000e+00> : vector<128x128xf32>
    %5 = tpu.matmul %3, %4, %cst {dimension_numbers = #tpu.dot_dimension_numbers<[1], [0], [0], [1], [0, 0, 1, 1], [], []>} : vector<128x128xbf16>, vector<128x128xbf16>, vector<128x128xf32> -> vector<128x128xf32>
    %6 = arith.truncf %5 : vector<128x128xf32> to vector<128x128xbf16>
    %cst_7 = arith.constant dense<0.000000e+00> : vector<128x128xf32>
    %7 = tpu.matmul %1, %6, %cst_7 {dimension_numbers = #tpu.dot_dimension_numbers<[1], [0], [0], [1], [0, 0, 1, 1], [], []>} : vector<128x128xbf16>, vector<128x128xbf16>, vector<128x128xf32> -> vector<128x128xf32>
    %c0_8 = arith.constant 0 : index
    %c0_9 = arith.constant 0 : index
    %8 = vector.load %arg7[%c0_8, %c0_9] : memref<1x128xf32, #tpu.memory_space<vmem>>, vector<1x128xf32>
    %9 = vector.broadcast %8 : vector<1x128xf32> to vector<128x128xf32>
    %10 = arith.addf %7, %9 : vector<128x128xf32>
    %c0_10 = arith.constant 0 : index
    %c0_11 = arith.constant 0 : index
    %11 = vector.load %arg10[%c0_10, %c0_11] : memref<1x128xf32, #tpu.memory_space<vmem>>, vector<1x128xf32>
    %12 = vector.broadcast %11 : vector<1x128xf32> to vector<128x128xf32>
    %13 = arith.mulf %10, %12 : vector<128x128xf32>
    %c0_12 = arith.constant 0 : index
    %c0_13 = arith.constant 0 : index
    %14 = vector.load %arg12[%c0_12, %c0_13] : memref<1x128xf32, #tpu.memory_space<vmem>>, vector<1x128xf32>
    %15 = vector.broadcast %14 : vector<1x128xf32> to vector<128x128xf32>
    %16 = arith.addf %13, %15 : vector<128x128xf32>
    %cst_14 = arith.constant 0.000000e+00 : f32
    %17 = vector.broadcast %cst_14 : f32 to vector<128x128xf32>
    %18 = arith.maximumf %16, %17 : vector<128x128xf32>
    %19 = arith.truncf %18 : vector<128x128xf32> to vector<128x128xbf16>
    %c0_15 = arith.constant 0 : index
    %c0_16 = arith.constant 0 : index
    %20 = vector.load %arg4[%c0_15, %c0_16] : memref<128x128xbf16, #tpu.memory_space<vmem>>, vector<128x128xbf16>
    %cst_17 = arith.constant dense<0.000000e+00> : vector<128x128xf32>
    %21 = tpu.matmul %19, %20, %cst_17 {dimension_numbers = #tpu.dot_dimension_numbers<[1], [0], [0], [1], [0, 0, 1, 1], [], []>} : vector<128x128xbf16>, vector<128x128xbf16>, vector<128x128xf32> -> vector<128x128xf32>
    %22 = arith.truncf %21 : vector<128x128xf32> to vector<128x128xbf16>
    %cst_18 = arith.constant dense<0.000000e+00> : vector<128x128xf32>
    %23 = tpu.matmul %1, %22, %cst_18 {dimension_numbers = #tpu.dot_dimension_numbers<[1], [0], [0], [1], [0, 0, 1, 1], [], []>} : vector<128x128xbf16>, vector<128x128xbf16>, vector<128x128xf32> -> vector<128x128xf32>
    %c0_19 = arith.constant 0 : index
    %c0_20 = arith.constant 0 : index
    %24 = vector.load %arg11[%c0_19, %c0_20] : memref<1x128xf32, #tpu.memory_space<vmem>>, vector<1x128xf32>
    %25 = vector.broadcast %24 : vector<1x128xf32> to vector<128x128xf32>
    %26 = arith.mulf %23, %25 : vector<128x128xf32>
    %c0_21 = arith.constant 0 : index
    %c0_22 = arith.constant 0 : index
    %27 = vector.load %arg13[%c0_21, %c0_22] : memref<1x128xf32, #tpu.memory_space<vmem>>, vector<1x128xf32>
    %28 = vector.broadcast %27 : vector<1x128xf32> to vector<128x128xf32>
    %29 = arith.addf %26, %28 : vector<128x128xf32>
    %cst_23 = arith.constant 0.000000e+00 : f32
    %30 = vector.broadcast %cst_23 : f32 to vector<128x128xf32>
    %31 = arith.maximumf %29, %30 : vector<128x128xf32>
    %32 = arith.truncf %31 : vector<128x128xf32> to vector<128x128xbf16>
    %c0_24 = arith.constant 0 : index
    %c0_25 = arith.constant 0 : index
    %33 = vector.load %arg5[%c0_24, %c0_25] : memref<128x128xbf16, #tpu.memory_space<vmem>>, vector<128x128xbf16>
    %cst_26 = arith.constant dense<0.000000e+00> : vector<128x128xf32>
    %34 = tpu.matmul %32, %33, %cst_26 {dimension_numbers = #tpu.dot_dimension_numbers<[1], [0], [0], [1], [0, 0, 1, 1], [], []>} : vector<128x128xbf16>, vector<128x128xbf16>, vector<128x128xf32> -> vector<128x128xf32>
    %35 = arith.truncf %34 : vector<128x128xf32> to vector<128x128xbf16>
    %cst_27 = arith.constant dense<0.000000e+00> : vector<128x128xf32>
    %36 = tpu.matmul %1, %35, %cst_27 {dimension_numbers = #tpu.dot_dimension_numbers<[1], [0], [0], [1], [0, 0, 1, 1], [], []>} : vector<128x128xbf16>, vector<128x128xbf16>, vector<128x128xf32> -> vector<128x128xf32>
    %c0_28 = arith.constant 0 : index
    %c0_29 = arith.constant 0 : index
    %37 = vector.load %arg8[%c0_28, %c0_29] : memref<1x128xf32, #tpu.memory_space<vmem>>, vector<1x128xf32>
    %38 = vector.broadcast %37 : vector<1x128xf32> to vector<128x128xf32>
    %39 = arith.addf %36, %38 : vector<128x128xf32>
    %cst_30 = arith.constant 5.000000e-01 : f32
    %40 = vector.broadcast %cst_30 : f32 to vector<128x128xf32>
    %41 = arith.mulf %40, %10 : vector<128x128xf32>
    %42 = arith.addf %39, %41 : vector<128x128xf32>
    %43 = arith.truncf %42 : vector<128x128xf32> to vector<128x128xbf16>
    %c0_31 = arith.constant 0 : index
    %c0_32 = arith.constant 0 : index
    %44 = vector.load %arg6[%c0_31, %c0_32] : memref<128x128xbf16, #tpu.memory_space<vmem>>, vector<128x128xbf16>
    %cst_33 = arith.constant dense<0.000000e+00> : vector<128x128xf32>
    %45 = tpu.matmul %43, %44, %cst_33 {dimension_numbers = #tpu.dot_dimension_numbers<[1], [0], [0], [1], [0, 0, 1, 1], [], []>} : vector<128x128xbf16>, vector<128x128xbf16>, vector<128x128xf32> -> vector<128x128xf32>
    %46 = arith.truncf %45 : vector<128x128xf32> to vector<128x128xbf16>
    %cst_34 = arith.constant dense<0.000000e+00> : vector<128x128xf32>
    %47 = tpu.matmul %1, %46, %cst_34 {dimension_numbers = #tpu.dot_dimension_numbers<[1], [0], [0], [1], [0, 0, 1, 1], [], []>} : vector<128x128xbf16>, vector<128x128xbf16>, vector<128x128xf32> -> vector<128x128xf32>
    %c0_35 = arith.constant 0 : index
    %c0_36 = arith.constant 0 : index
    %48 = vector.load %arg9[%c0_35, %c0_36] : memref<1x128xf32, #tpu.memory_space<vmem>>, vector<1x128xf32>
    %49 = vector.broadcast %48 : vector<1x128xf32> to vector<128x128xf32>
    %50 = arith.addf %47, %49 : vector<128x128xf32>
    %c0_37 = arith.constant 0 : index
    %c0_38 = arith.constant 0 : index
    %c0_39 = arith.constant 0 : index
    %51 = vector.load %arg14[%c0_37, %c0_38, %c0_39] : memref<1x128x128xf32, #tpu.memory_space<vmem>>, vector<1x128x128xf32>
    %52 = vector.shape_cast %51 : vector<1x128x128xf32> to vector<128x128xf32>
    %53 = vector.shape_cast %50 : vector<128x128xf32> to vector<1x128x128xf32>
    tpu.vector_store %arg14[%c0_37, %c0_38, %c0_39], %53 {strides = array<i32>} : memref<1x128x128xf32, #tpu.memory_space<vmem>>, vector<1x128x128xf32>,
    return
  }
  func.func @transform_0(%arg0: i32) -> (i32, i32, i32) {
    %c0_i32 = arith.constant 0 : i32
    %c0_i32_0 = arith.constant 0 : i32
    %c0_i32_1 = arith.constant 0 : i32
    return %arg0, %c0_i32, %c0_i32_0 : i32, i32, i32
  }
  func.func @transform_1(%arg0: i32) -> (i32, i32, i32) {
    %c0_i32 = arith.constant 0 : i32
    %c0_i32_0 = arith.constant 0 : i32
    %c0_i32_1 = arith.constant 0 : i32
    return %arg0, %c0_i32, %c0_i32_0 : i32, i32, i32
  }
  func.func @transform_2(%arg0: i32) -> (i32, i32) {
    %c0_i32 = arith.constant 0 : i32
    %c0_i32_0 = arith.constant 0 : i32
    %c0_i32_1 = arith.constant 0 : i32
    return %c0_i32, %c0_i32_0 : i32, i32
  }
  func.func @transform_3(%arg0: i32) -> (i32, i32) {
    %c0_i32 = arith.constant 0 : i32
    %c0_i32_0 = arith.constant 0 : i32
    %c0_i32_1 = arith.constant 0 : i32
    return %c0_i32, %c0_i32_0 : i32, i32
  }
  func.func @transform_4(%arg0: i32) -> (i32, i32) {
    %c0_i32 = arith.constant 0 : i32
    %c0_i32_0 = arith.constant 0 : i32
    %c0_i32_1 = arith.constant 0 : i32
    return %c0_i32, %c0_i32_0 : i32, i32
  }
  func.func @transform_5(%arg0: i32) -> (i32, i32) {
    %c0_i32 = arith.constant 0 : i32
    %c0_i32_0 = arith.constant 0 : i32
    %c0_i32_1 = arith.constant 0 : i32
    return %c0_i32, %c0_i32_0 : i32, i32
  }
  func.func @transform_6(%arg0: i32) -> (i32, i32) {
    %c0_i32 = arith.constant 0 : i32
    %c0_i32_0 = arith.constant 0 : i32
    %c0_i32_1 = arith.constant 0 : i32
    return %c0_i32, %c0_i32_0 : i32, i32
  }
  func.func @transform_7(%arg0: i32) -> (i32, i32) {
    %c0_i32 = arith.constant 0 : i32
    %c0_i32_0 = arith.constant 0 : i32
    %c0_i32_1 = arith.constant 0 : i32
    return %c0_i32, %c0_i32_0 : i32, i32
  }
  func.func @transform_8(%arg0: i32) -> (i32, i32) {
    %c0_i32 = arith.constant 0 : i32
    %c0_i32_0 = arith.constant 0 : i32
    %c0_i32_1 = arith.constant 0 : i32
    return %c0_i32, %c0_i32_0 : i32, i32
  }
  func.func @transform_9(%arg0: i32) -> (i32, i32) {
    %c0_i32 = arith.constant 0 : i32
    %c0_i32_0 = arith.constant 0 : i32
    %c0_i32_1 = arith.constant 0 : i32
    return %c0_i32, %c0_i32_0 : i32, i32
  }
  func.func @transform_10(%arg0: i32) -> (i32, i32) {
    %c0_i32 = arith.constant 0 : i32
    %c0_i32_0 = arith.constant 0 : i32
    %c0_i32_1 = arith.constant 0 : i32
    return %c0_i32, %c0_i32_0 : i32, i32
  }
  func.func @transform_11(%arg0: i32) -> (i32, i32) {
    %c0_i32 = arith.constant 0 : i32
    %c0_i32_0 = arith.constant 0 : i32
    %c0_i32_1 = arith.constant 0 : i32
    return %c0_i32, %c0_i32_0 : i32, i32
  }
  func.func @transform_12(%arg0: i32) -> (i32, i32) {
    %c0_i32 = arith.constant 0 : i32
    %c0_i32_0 = arith.constant 0 : i32
    %c0_i32_1 = arith.constant 0 : i32
    return %c0_i32, %c0_i32_0 : i32, i32
  }
  func.func @transform_13(%arg0: i32) -> (i32, i32, i32) {
    %c0_i32 = arith.constant 0 : i32
    %c0_i32_0 = arith.constant 0 : i32
    %c0_i32_1 = arith.constant 0 : i32
    return %arg0, %c0_i32, %c0_i32_0 : i32, i32, i32
  }
}

</mosaic_0001>

<bundles_post_ra>
// kernel: forward.1
= control target key start
LH: loop header
LB: loop body
LE: loop exit
PB: predicated region body
PF: predicated region fallthrough
CT: control target
= control target key end

     0   :  { %s3491_s0 = inlined_call_operand.hbm [shape: bf16[2,128,128], index: 0, kind: input, shape index: {}]   ;;  %s3492_s1 = inlined_call_operand.hbm [shape: bf16[2,128,128], index: 1, kind: input, shape index: {}]   ;;  %s3493_s2 = inlined_call_operand.hbm [shape: bf16[128,128], index: 2, kind: input, shape index: {}]   ;;  %s3494_s3 = inlined_call_operand.hbm [shape: bf16[128,128], index: 3, kind: input, shape index: {}]   ;;  %s3495_s4 = inlined_call_operand.hbm [shape: bf16[128,128], index: 4, kind: input, shape index: {}]   ;;  %s3496_s5 = inlined_call_operand.hbm [shape: bf16[128,128], index: 5, kind: input, shape index: {}]   ;;  %s3497_s6 = inlined_call_operand.vmem [shape: f32[1,128], index: 6, kind: input, shape index: {}]   ;;  %s3498_s7 = inlined_call_operand.vmem [shape: f32[1,128], index: 7, kind: input, shape index: {}]   ;;  %s3499_s8 = inlined_call_operand.vmem [shape: f32[1,128], index: 8, kind: input, shape index: {}]   ;;  %s3500_s9 = inlined_call_operand.vmem [shape: f32[1,128], index: 9, kind: input, shape index: {}]   ;;  %s3501_s10 = inlined_call_operand.vmem [shape: f32[1,128], index: 10, kind: input, shape index: {}]   ;;  %s3502_s11 = inlined_call_operand.vmem [shape: f32[1,128], index: 11, kind: input, shape index: {}]   ;;  %s3503_s12 = inlined_call_operand.vmem [shape: f32[1,128], index: 12, kind: input, shape index: {}]   ;;  %s3504_s13 = inlined_call_operand.vmem [shape: f32[2,128,128], index: 13, kind: output, shape index: {}]  }
   0x1   :  { %3514 = sst [smem:[#allocation20_spill]] %s3491_s0 }
   0x2   :  { %3515 = sst [smem:[#allocation21_spill]] %s3493_s2 }
   0x3   :  { %3516 = sst [smem:[#allocation22_spill]] %s3494_s3 }
   0x4   :  { %3517 = sst [smem:[#allocation23_spill]] %s3495_s4 }
   0x5   :  { %3518 = sst [smem:[#allocation24_spill]] %s3496_s5 }
   0x6   :  { %3519 = sst [smem:[#allocation25_spill]] %s3504_s13 }
   0x7   :  { %18 = vsyncpa [#allocation3], 0 }
   0x8   :  { %20 = vsyncpa [#allocation3 + $0x1], 0 }
   0x9   :  { %21 = vsyncpa [#allocation5], 0 }
   0xa   :  { %23 = vsyncpa [#allocation5 + $0x1], 0 }
   0xb   :  { %24 = vsyncpa [#allocation8], 0 }
   0xc   :  { %25 = vsyncpa [#allocation11], 0  ;;  %s2988_s25 = smov 0   ;;  %s2990_s26 = smov 0  }
   0xd   :  { %s2992_s27 = smov 0   ;;  %s2994_s28 = smov 0  }
   0xe LB: > { %3520 = sst [smem:[#allocation17_spill]] %s2904_s27  ;;  %s3007_s29 = sadd.s32 4294967295, %s2908_s28   ;;  %s2908_s28 = sphi %s2994_s28, %s3542_s28   ;;  %s2904_s27 = sphi %s2992_s27, %s3544_s27   ;;  %s2900_s26 = sphi %s2990_s26, %s3546_s26   ;;  %s2896_s25 = sphi %s2988_s25, %s3545_s25  }
   0xf   : > { %p51_p0 = scmp.ne.s32.totalorder %s2900_s26, %s2896_s25  ;;  %p3512_p1 = scmp.eq.s32.totalorder %s3007_s29, 0 }
  0x10   : > { %p2098_p2 = scmp.ge.s32.totalorder %s2908_s28, 1  ;;  %p345_p3 = scmp.lt.s32.totalorder %s2908_s28, 3 }
  0x11   : > { %p3015_p4 = por %p3512_p1, %p51_p0  ;;  %s2910_s15 = smov [#allocation6]  }
  0x12   : > { %p3019_p5 = pnand %p2098_p2, %p345_p3  ;;  %s357_s16 = sshll.u32 %s2910_s15, 4  ;;  %s358_s16 = int_to_ptr.vmem [resolvable:$true] %s357_s16 }
  0x13   : > { %s3521_s30 = scalar_select %p3015_p4, 1, 0 }
  0x14   : > { %p2583_p6 = pneg %p3019_p5  ;;  %s2911_s18 = smov [#allocation7]  }
  0x15   : > { %s370_s19 = sshll.u32 %s2911_s18, 4  ;;  %s2912_s20 = smov [#allocation9]   ;;  %s371_s19 = int_to_ptr.vmem [resolvable:$true] %s370_s19 }
  0x16   : > { %p3027_p7 = pnand %p2583_p6, %p3512_p1  ;;  %s383_s21 = sshll.u32 %s2912_s20, 4  ;;  %s384_s21 = int_to_ptr.vmem [resolvable:$true] %s383_s21 }
  0x17   : > { %s2709_s22 = scalar_lea.vmem %s358_s16, 1024  ;;  %p2717_p12 = scmp.lt.s32.totalorder %s358_s16, %s358_s16 }
  0x18   : > { %p2700_p8 = pneg %p3027_p7  ;;  %p2710_p9 = scmp.ne.s32.totalorder %s358_s16, %s2709_s22 }
  0x19   : > { %p2718_p13 = scmp.lt.s32.totalorder %s2709_s22, %s2709_s22 }
  0x1a   : > { %p2712_p10 = pnand %p2710_p9, %p2700_p8 }
  0x1b   : > { %p2719_p0 = por %p2718_p13, %p2717_p12 }
  0x1c   : > { %p2713_p11 = pneg %p2712_p10 }
  0x1e   : > { %p2720_p2 = pnand %p2719_p0, %p2713_p11 }
  0x20   : > { %2723 = shalt.err (!%p2720_p2)
}
  0x21   : > { %s3505_s23 = smov 64   ;;  %s3507_s24 = smov 4  }
  0x22   : > { %s3524_s2 = sld [smem:[#allocation21_spill]]  ;;  %s2735_s18 = scalar_lea.vmem %s371_s19, 1024 }
  0x23   : > { %p2736_p3 = scmp.ne.s32.totalorder %s371_s19, %s2735_s18  ;;  %p2743_p10 = scmp.lt.s32.totalorder %s371_s19, %s371_s19 }
  0x24   : > { %p2744_p11 = scmp.lt.s32.totalorder %s2735_s18, %s2735_s18 }
  0x25   : > { %p2738_p6 = pnand %p2736_p3, %p2700_p8 }
  0x26   : > { %p2745_p12 = por %p2744_p11, %p2743_p10 }
  0x27   : > { %p2739_p9 = pneg %p2738_p6 }
  0x28   : > { %2586 = dma.hbm_to_vmem [thread:$0]  (!%p3027_p7), %s3524_s2, 1024, %s358_s16, [#allocation5], %s3505_s23, %s3505_s23, %s3507_s24  }
  0x29   : > { %p2746_p13 = pnand %p2745_p12, %p2739_p9 }
  0x2b   : > { %2749 = shalt.err (!%p2746_p13)
}
  0x2c   : > { %s3525_s3 = sld [smem:[#allocation22_spill]]  ;;  %s2761_s16 = scalar_lea.vmem %s384_s21, 1024 }
  0x2d   : > { %p2762_p0 = scmp.ne.s32.totalorder %s384_s21, %s2761_s16  ;;  %p2769_p6 = scmp.lt.s32.totalorder %s384_s21, %s384_s21 }
  0x2e   : > { %p2770_p9 = scmp.lt.s32.totalorder %s2761_s16, %s2761_s16 }
  0x2f   : > { %p2764_p2 = pnand %p2762_p0, %p2700_p8 }
  0x30   : > { %p2771_p10 = por %p2770_p9, %p2769_p6 }
  0x31   : > { %p2765_p3 = pneg %p2764_p2 }
  0x32   : > { %2589 = dma.hbm_to_vmem [thread:$0]  (!%p3027_p7), %s3525_s3, 1024, %s371_s19, [#allocation8], %s3505_s23, %s3505_s23, %s3507_s24  }
  0x33   : > { %p2772_p11 = pnand %p2771_p10, %p2765_p3 }
  0x35   : > { %2775 = shalt.err (!%p2772_p11)
}
  0x36   : > { %s3526_s4 = sld [smem:[#allocation23_spill]]  ;;  %s2915_s19 = smov [#allocation10]  }
  0x37   : > { %s396_s18 = sshll.u32 %s2915_s19, 4  ;;  %s397_s18 = int_to_ptr.vmem [resolvable:$true] %s396_s18 }
  0x38   : > { %s2787_s20 = scalar_lea.vmem %s397_s18, 1024  ;;  %p2795_p2 = scmp.lt.s32.totalorder %s397_s18, %s397_s18 }
  0x39   : > { %p2788_p12 = scmp.ne.s32.totalorder %s397_s18, %s2787_s20  ;;  %p2796_p3 = scmp.lt.s32.totalorder %s2787_s20, %s2787_s20 }
  0x3b   : > { %p2790_p13 = pnand %p2788_p12, %p2700_p8  ;;  %p2797_p6 = por %p2796_p3, %p2795_p2 }
  0x3c   : > { %2592 = dma.hbm_to_vmem [thread:$0]  (!%p3027_p7), %s3526_s4, 1024, %s384_s21, [#allocation8], %s3505_s23, %s3505_s23, %s3507_s24  }
  0x3d   : > { %p2791_p0 = pneg %p2790_p13 }
  0x3f   : > { %p2798_p9 = pnand %p2797_p6, %p2791_p0 }
  0x41   : > { %2801 = shalt.err (!%p2798_p9)
}
  0x42   : > { %s3527_s5 = sld [smem:[#allocation24_spill]]  ;;  %s3078_s16 = sadd.s32 1, %s2908_s28  }
  0x43   : > { %3528 = sst [smem:[#allocation18_spill]] %s3078_s16  ;;  %s38_s17 = sadd.s32 1, %s2904_s27 }
  0x44   : > { %s35_s25 = ssub.s32 %s2908_s28, %s3078_s16  ;;  %p45_p8 = scmp.ne.s32.totalorder %s2904_s27, %s2900_s26 }
  0x45   : > { %p36_p10 = scmp.eq.s32.totalorder %s35_s25, 0  ;;  %p46_p11 = scmp.eq.s32.totalorder %s2908_s28, 0 }
  0x46   : > { %p2607_p12 = scmp.lt.s32.totalorder %s2908_s28, 2  ;;  %s431_s15 = sand.u32 1, %s2904_s27  }
  0x47   : > { %s3089_s19 = scalar_select %p36_p10, %s2904_s27, %s38_s17  }
  0x48   : > { %2595 = dma.hbm_to_vmem [thread:$0]  (!%p3027_p7), %s3527_s5, 1024, %s397_s18, [#allocation11], %s3505_s23, %s3505_s23, %s3507_s24  }
  0x49   : > { %3529 = sst [smem:[#allocation19_spill]] %s3089_s19  ;;  %p47_p13 = por %p46_p11, %p45_p8 }
  0x4a   : > { %s3091_s20 = sshll.u32 %s431_s15, 6  ;;  %s2176_s21 = sshll.u32 %s2908_s28, 10 }
  0x4b   : > { %s3530_s0 = sld [smem:[#allocation20_spill]]  ;;  %s435_s23 = scalar_lea.vmem [#allocation2], %s3091_s20 }
  0x4c   : > { %s442_s25 = sshll.u32 %s435_s23, 4  ;;  %p3100_p7 = pnand %p2607_p12, %p47_p13  ;;  %s3104_s25 = int_to_ptr.vmem [resolvable:$true] %s442_s25 }
  0x4d   : > { %s3109_s4 = scalar_lea.hbm %s3492_s1, %s2176_s21  ;;  %s3111_s2 = scalar_lea.sflag [#allocation3], %s431_s15 }
  0x4e   : > { %p2804_p2 = pneg %p3100_p7 }
  0x51   : > { %s3097_s18 = scalar_lea.hbm %s3530_s0, %s2176_s21  ;;  %s2807_s19 = scalar_lea.hbm %s3530_s0, 2048 }
  0x52   : > { %s2802_s22 = scalar_lea.hbm %s3097_s18, 1024  ;;  %p2808_p9 = scmp.lt.s32.totalorder %s3097_s18, %s3530_s0 }
  0x53   : > { %p2803_p0 = scmp.ne.s32.totalorder %s3097_s18, %s2802_s22  ;;  %p2809_p8 = scmp.lt.s32.totalorder %s2807_s19, %s2802_s22 }
  0x55   : > { %p2805_p3 = pnand %p2804_p2, %p2803_p0  ;;  %p2810_p10 = por %p2809_p8, %p2808_p9 }
  0x57   : > { %p2806_p6 = pneg %p2805_p3 }
  0x59   : > { %p2811_p11 = pnand %p2810_p10, %p2806_p6 }
  0x5b   : > { %2814 = shalt.err (!%p2811_p11)
}
  0x5c   : > { %s2815_s3 = scalar_lea.vmem %s3104_s25, 1024  ;;  %s2916_s5 = smov [#allocation2]  }
  0x5d   : > { %p2816_p12 = scmp.ne.s32.totalorder %s3104_s25, %s2815_s3  ;;  %s2820_s15 = sshll.u32 %s2916_s5, 4  ;;  %s2821_s15 = int_to_ptr.vmem [resolvable:$false] %s2820_s15 }
  0x5e   : > { %s2822_s21 = scalar_lea.vmem %s2821_s15, 2048  ;;  %p2823_p3 = scmp.lt.s32.totalorder %s3104_s25, %s2821_s15 }
  0x5f   : > { %p2818_p13 = pnand %p2816_p12, %p2804_p2  ;;  %p2824_p1 = scmp.lt.s32.totalorder %s2822_s21, %s2815_s3 }
  0x61   : > { %p2819_p0 = pneg %p2818_p13  ;;  %p2825_p4 = por %p2824_p1, %p2823_p3 }
  0x63   : > { %p2826_p9 = pnand %p2825_p4, %p2819_p0 }
  0x65   : > { %2829 = shalt.err (!%p2826_p9)
}
  0x66   : > { %s3532_s27 = smov 4   ;;  %s3533_s16 = smov 64  }
  0x67   : > { %2599 = dma.hbm_to_vmem [thread:$0]  (!%p3100_p7), %s3097_s18, 1024, %s3104_s25, %s3111_s2, %s3533_s16, %s3533_s16, %s3532_s27  }
  0x68   : > { %s456_s19 = scalar_lea.vmem [#allocation4], %s3091_s20  ;;  %s452_s22 = sand.u32 1, %s2908_s28  }
  0x69   : > { %s463_s17 = sshll.u32 %s456_s19, 4  ;;  %s453_s23 = scalar_lea.sflag [#allocation5], %s452_s22  ;;  %s3143_s17 = int_to_ptr.vmem [resolvable:$true] %s463_s17 }
  0x6a   : > { %s2830_s3 = scalar_lea.hbm %s3109_s4, 1024  ;;  %s2835_s21 = scalar_lea.hbm %s3492_s1, 2048 }
  0x6b   : > { %p2831_p1 = scmp.ne.s32.totalorder %s3109_s4, %s2830_s3  ;;  %p2836_p8 = scmp.lt.s32.totalorder %s3109_s4, %s3492_s1 }
  0x6c   : > { %p2837_p10 = scmp.lt.s32.totalorder %s2835_s21, %s2830_s3 }
  0x6d   : > { %p2833_p4 = pnand %p2831_p1, %p2804_p2 }
  0x6e   : > { %p2838_p11 = por %p2837_p10, %p2836_p8 }
  0x6f   : > { %p2834_p6 = pneg %p2833_p4 }
  0x71   : > { %p2839_p12 = pnand %p2838_p11, %p2834_p6 }
  0x73   : > { %2842 = shalt.err (!%p2839_p12)
}
  0x74   : > { %s2843_s28 = scalar_lea.vmem %s3143_s17, 1024  ;;  %s2917_s20 = smov [#allocation4]  }
  0x75   : > { %p2844_p13 = scmp.ne.s32.totalorder %s3143_s17, %s2843_s28  ;;  %s2848_s18 = sshll.u32 %s2917_s20, 4  ;;  %s2849_s18 = int_to_ptr.vmem [resolvable:$false] %s2848_s18 }
  0x76   : > { %s2850_s25 = scalar_lea.vmem %s2849_s18, 2048  ;;  %p2851_p9 = scmp.lt.s32.totalorder %s3143_s17, %s2849_s18 }
  0x77   : > { %p2846_p0 = pnand %p2844_p13, %p2804_p2  ;;  %p2852_p1 = scmp.lt.s32.totalorder %s2850_s25, %s2843_s28 }
  0x79   : > { %p2847_p3 = pneg %p2846_p0  ;;  %p2853_p4 = por %p2852_p1, %p2851_p9 }
  0x7b   : > { %p2854_p8 = pnand %p2853_p4, %p2847_p3 }
  0x7d   : > { %2857 = shalt.err (!%p2854_p8)
}
  0x7e   : > { %2602 = dma.hbm_to_vmem [thread:$0]  (!%p3100_p7), %s3109_s4, 1024, %s3143_s17, %s453_s23, %s3533_s16, %s3533_s16, %s3532_s27  }
  0x7f   : > { %475 = sbr.rel (%p3019_p5) target bundleno = 2048 (0x800), region = 72  ;;  %s477_s0 = sand.u32 (!%p3019_p5), 1, %s2900_s26  }
  0x80   : > { %s2111_s13 = sshll.u32 (!%p3019_p5), %s477_s0, 6  ;;  %s478_s2 = scalar_lea.sflag (!%p3019_p5), [#allocation3], %s477_s0 }
  0x81   : > { %s3173_s19 = scalar_lea.vmem (!%p3019_p5), [#allocation2], %s2111_s13  ;;  %p3534_p2 = scmp.ne.s32.totalorder (!%p3019_p5), %s3521_s30, 0 }
  0x84   : > { %2875 = dma.done.wait (%p3534_p2), %s478_s2, 1024  }
  0x85   : > { %2877 = vsyncadd (%p3534_p2), %s478_s2, 4294966272  ;;  %s486_s24 = sand.u32 1, %s3007_s29   ;;  %s3180_s4 = scalar_lea.vmem [#allocation4], %s2111_s13 }
  0x86   : > { %s487_s22 = scalar_lea.sflag [#allocation5], %s486_s24 }
  0x87   : > { %2879 = dma.done.wait (%p3534_p2), %s487_s22, 1024  }
  0x88   : > { %2881 = vsyncadd (%p3534_p2), %s487_s22, 4294966272  ;;  %p3535_p5 = scmp.eq.s32.totalorder %s3007_s29, 0 }
  0x8a   : > { %2883 = dma.done.wait (%p3535_p5), [#allocation5], 1024   ;;  %p3536_p7 = pmov %p3535_p5 }
  0x8b   : > { %p3537_p6 = pmov %p3535_p5 }
  0x8c   : > { %2885 = vsyncadd (%p3536_p7), [#allocation5], 4294966272 }
  0x8d   : > { %2887 = dma.done.wait (%p3537_p6), [#allocation8], 2048   ;;  %p3538_p10 = pmov %p3535_p5 }
  0x8e   : > { %p3539_p11 = pmov %p3535_p5 }
  0x8f   : > { %2889 = vsyncadd (%p3538_p10), [#allocation8], 4294965248 }
  0x90   : > { %2891 = dma.done.wait (%p3539_p11), [#allocation11], 1024   ;;  %p3540_p12 = pmov %p3535_p5 }
  0x91   : > { %v2650_v0 = vld [vmem:[#allocation6 + $0x38] sm:$0xff]   ;;  %v2651_v1 = vld [vmem:[#allocation6 + $0x30] sm:$0xff]   ;;  %v2652_v2 = vld [vmem:[#allocation6 + $0x28] sm:$0xff]   ;;  %p554_p13 = scmp.lt.s32.totalorder %s3007_s29, 1 }
  0x92   : > { %2893 = vsyncadd (%p3540_p12), [#allocation11], 4294966272  ;;  %2307 = vmatprep.subr.bf16.mxu0 %v2650_v0  ;;  %v2653_v3 = vld [vmem:[#allocation6 + $0x20] sm:$0xff]   ;;  %v2654_v5 = vld [vmem:[#allocation6 + $0x18] sm:$0xff]  }
  0x93   : > { %2308 = vmatpush3.bf16.msra.mxu0 %v2650_v0  ;;  %v2658_v4 = vld [vmem:[%s3180_s4] sm:$0xff]   ;;  %v2655_v6 = vld [vmem:[#allocation6 + $0x10] sm:$0xff]   ;;  %v2656_v7 = vld [vmem:[#allocation6 + $0x8] sm:$0xff]   ;;  %s3548_s29 = smov (!%p554_p13, %s3007_s29), 1 }
  0x94   : > { %2309 = vmatprep.subr.bf16.mxu0 %v2651_v1  ;;  %2323 = vmatprep.mubr.bf16.mxu0 %v2658_v4  ;;  %v2657_v8 = vld [vmem:[#allocation6] sm:$0xff]   ;;  %v2659_v9 = vld [vmem:[%s3180_s4 + $0x8] sm:$0xff]   ;;  %v2660_v10 = vld [vmem:[%s3180_s4 + $0x10] sm:$0xff]   ;;  %s2178_s18 = sshll.u32 %s3548_s29, 7 }
  0x95   : > { %v2661_v11 = vld [vmem:[%s3180_s4 + $0x18] sm:$0xff]   ;;  %v2662_v12 = vld [vmem:[%s3180_s4 + $0x20] sm:$0xff]   ;;  %v2663_v13 = vld [vmem:[%s3180_s4 + $0x28] sm:$0xff]  }
  0x96   : > { %v2664_v14 = vld [vmem:[%s3180_s4 + $0x30] sm:$0xff]   ;;  %v2665_v15 = vld [vmem:[%s3180_s4 + $0x38] sm:$0xff]   ;;  %v3207_v16 = vld [vmem:[%s3173_s19] sm:$0xff]  }
  0x97   : > { %2310 = vmatpush3.bf16.msra.mxu0 %v2651_v1  ;;  %2355 = vmatprep.mubr.bf16.mxu1 %v3207_v16  ;;  %v2674_v17 = vld [vmem:[#allocation7 + $0x38] sm:$0xff]   ;;  %v2675_v18 = vld [vmem:[#allocation7 + $0x30] sm:$0xff]   ;;  %v2676_v19 = vld [vmem:[#allocation7 + $0x28] sm:$0xff]  }
  0x98   : > { %2311 = vmatprep.subr.bf16.mxu0 %v2652_v2  ;;  %v2677_v20 = vld [vmem:[#allocation7 + $0x20] sm:$0xff]   ;;  %v3211_v45 = vld [vmem:[%s3173_s19 + $0x8] sm:$0xff]   ;;  %v3214_v46 = vld [vmem:[%s3173_s19 + $0x10] sm:$0xff]  }
  0x99   : > { %v3219_v47 = vld [vmem:[%s3173_s19 + $0x18] sm:$0xff]   ;;  %v3222_v48 = vld [vmem:[%s3173_s19 + $0x20] sm:$0xff]   ;;  %v3227_v49 = vld [vmem:[%s3173_s19 + $0x28] sm:$0xff]  }
  0x9a   : > { %v3230_v50 = vld [vmem:[%s3173_s19 + $0x30] sm:$0xff]   ;;  %v3235_v51 = vld [vmem:[%s3173_s19 + $0x38] sm:$0xff]   ;;  %v2680_v54 = vld [vmem:[#allocation7 + $0x8] sm:$0xff]   ;;  %s3541_s19 = sld [smem:[#allocation25_spill]] }
  0x9b   : > { %2312 = vmatpush3.bf16.msra.mxu0 %v2652_v2  ;;  %v2678_v52 = vld [vmem:[#allocation7 + $0x18] sm:$0xff]   ;;  %v2679_v53 = vld [vmem:[#allocation7 + $0x10] sm:$0xff]   ;;  %v2681_v55 = vld [vmem:[#allocation7] sm:$0xff]  }
  0x9c   : > { %2313 = vmatprep.subr.bf16.mxu0 %v2653_v3  ;;  %v3242_v57 = vld [vmem:[%s3497_s6] ss:$0 sm:$0xff] }
  0x9d   : > { %v3253_v61 = vld [vmem:[%s3500_s9] ss:$0 sm:$0xff] }
  0x9e   : > { %v3267_v4 = vld [vmem:[%s3502_s11] ss:$0 sm:$0xff] }
  0x9f   : > { %2314 = vmatpush3.bf16.msra.mxu0 %v2653_v3 }
  0xa0   : > { %2315 = vmatprep.subr.bf16.mxu0 %v2654_v5  ;;  %s3460_s24 = scalar_lea.vmem %s3541_s19, %s2178_s18 }
  0xa3   : > { %2316 = vmatpush3.bf16.msra.mxu0 %v2654_v5 }
  0xa4   : > { %2317 = vmatprep.subr.bf16.mxu0 %v2655_v6 }
  0xa7   : > { %2318 = vmatpush3.bf16.msra.mxu0 %v2655_v6 }
  0xa8   : > { %2319 = vmatprep.subr.bf16.mxu0 %v2656_v7 }
  0xab   : > { %2320 = vmatpush3.bf16.msra.mxu0 %v2656_v7 }
  0xac   : > { %2321 = vmatprep.subr.bf16.mxu0 %v2657_v8 }
  0xaf   : > { %2322 = vmatpush3.bf16.msra.mxu0 %v2657_v8 }
  0xb0   : > { %2371 = vmatprep.subr.bf16.mxu0 %v2674_v17 }
  0xb2   : > { %2324 = vmatmul.mubr.bf16.vlgmr.msra.gmra.mxu0 %v2659_v9 }
  0xb3   : > { %2327 = vmatprep.mubr.bf16.mxu0 %v2660_v10  ;;  %2372 = vmatpush3.bf16.msra.mxu0 %v2674_v17 }
  0xb4   : > { %2373 = vmatprep.subr.bf16.mxu0 %v2675_v18 }
  0xb7   : > { %2374 = vmatpush3.bf16.msra.mxu0 %v2675_v18 }
  0xb8   : > { %2375 = vmatprep.subr.bf16.mxu0 %v2676_v19 }
  0xba   : > { %2328 = vmatmul.mubr.bf16.gmra.mxu0 %v2661_v11 }
  0xbb   : > { %2331 = vmatprep.mubr.bf16.mxu0 %v2662_v12  ;;  %2376 = vmatpush3.bf16.msra.mxu0 %v2676_v19 }
  0xbc   : > { %2377 = vmatprep.subr.bf16.mxu0 %v2677_v20 }
  0xbf   : > { %2378 = vmatpush3.bf16.msra.mxu0 %v2677_v20 }
  0xc0   : > { %2379 = vmatprep.subr.bf16.mxu0 %v2678_v52 }
  0xc2   : > { %2332 = vmatmul.mubr.bf16.gmra.mxu0 %v2663_v13 }
  0xc3   : > { %2335 = vmatprep.mubr.bf16.mxu0 %v2664_v14  ;;  %2380 = vmatpush3.bf16.msra.mxu0 %v2678_v52 }
  0xc4   : > { %2381 = vmatprep.subr.bf16.mxu0 %v2679_v53 }
  0xc7   : > { %2382 = vmatpush3.bf16.msra.mxu0 %v2679_v53 }
  0xc8   : > { %2383 = vmatprep.subr.bf16.mxu0 %v2680_v54 }
  0xca   : > { %2336 = vmatmul.mubr.bf16.gmra.mxu0 %v2665_v15 }
  0xcb   : > { %2384 = vmatpush3.bf16.msra.mxu0 %v2680_v54 }
  0xcc   : > { %2385 = vmatprep.subr.bf16.mxu0 %v2681_v55 }
  0xcf   : > { %2386 = vmatpush3.bf16.msra.mxu0 %v2681_v55 }
 0x172   : > { %v2325_v21 = vpop.f32.mrf.mxu0 }
 0x174   : > { %v738_v22 = vpop.f32.mrf.mxu0 }
 0x176   : > { %v2326_v23 = vpop.f32.mrf.mxu0 }
 0x177   : > { %v802_v43 = vpack.c.bf16 %v2326_v23, %v2325_v21 }
 0x178   : > { %v741_v24 = vpop.f32.mrf.mxu0 }
 0x179   : > { %v801_v44 = vpack.c.bf16 %v741_v24, %v738_v22 }
 0x17a   : > { %v2329_v25 = vpop.f32.mrf.mxu0 }
 0x17c   : > { %v754_v26 = vpop.f32.mrf.mxu0 }
 0x17e   : > { %v2330_v27 = vpop.f32.mrf.mxu0 }
 0x17f   : > { %v804_v41 = vpack.c.bf16 %v2330_v27, %v2329_v25 }
 0x180   : > { %v757_v28 = vpop.f32.mrf.mxu0 }
 0x181   : > { %v803_v42 = vpack.c.bf16 %v757_v28, %v754_v26 }
 0x182   : > { %v2333_v29 = vpop.f32.mrf.mxu0 }
 0x184   : > { %v770_v30 = vpop.f32.mrf.mxu0 }
 0x186   : > { %v2334_v31 = vpop.f32.mrf.mxu0 }
 0x187   : > { %v806_v39 = vpack.c.bf16 %v2334_v31, %v2333_v29 }
 0x188   : > { %v773_v32 = vpop.f32.mrf.mxu0 }
 0x189   : > { %v805_v40 = vpack.c.bf16 %v773_v32, %v770_v30 }
 0x18a   : > { %v2337_v33 = vpop.f32.mrf.mxu0 }
 0x18c   : > { %v786_v34 = vpop.f32.mrf.mxu0 }
 0x18e   : > { %v2338_v35 = vpop.f32.mrf.mxu0 }
 0x18f   : > { %v808_v36 = vpack.c.bf16 %v2338_v35, %v2337_v33 }
 0x190   : > { %v789_v37 = vpop.f32.mrf.mxu0 }
 0x191   : > { %v807_v38 = vpack.c.bf16 %v789_v37, %v786_v34  ;;  %2339 = vmatprep.subr.bf16.mxu1 %v808_v36 }
 0x192   : > { %2340 = vmatpush3.bf16.msra.mxu1 %v808_v36 }
 0x193   : > { %2341 = vmatprep.subr.bf16.mxu1 %v807_v38 }
 0x196   : > { %2342 = vmatpush3.bf16.msra.mxu1 %v807_v38 }
 0x197   : > { %2343 = vmatprep.subr.bf16.mxu1 %v806_v39 }
 0x19a   : > { %2344 = vmatpush3.bf16.msra.mxu1 %v806_v39 }
 0x19b   : > { %2345 = vmatprep.subr.bf16.mxu1 %v805_v40 }
 0x19e   : > { %2346 = vmatpush3.bf16.msra.mxu1 %v805_v40 }
 0x19f   : > { %2347 = vmatprep.subr.bf16.mxu1 %v804_v41 }
 0x1a2   : > { %2348 = vmatpush3.bf16.msra.mxu1 %v804_v41 }
 0x1a3   : > { %2349 = vmatprep.subr.bf16.mxu1 %v803_v42 }
 0x1a6   : > { %2350 = vmatpush3.bf16.msra.mxu1 %v803_v42 }
 0x1a7   : > { %2351 = vmatprep.subr.bf16.mxu1 %v802_v43 }
 0x1aa   : > { %2352 = vmatpush3.bf16.msra.mxu1 %v802_v43 }
 0x1ab   : > { %2353 = vmatprep.subr.bf16.mxu1 %v801_v44 }
 0x1ae   : > { %2354 = vmatpush3.bf16.msra.mxu1 %v801_v44 }
 0x1b1   : > { %2356 = vmatmul.mubr.bf16.vlgmr.msra.gmra.mxu1 %v3211_v45 }
 0x1b2   : > { %2359 = vmatprep.mubr.bf16.mxu1 %v3214_v46 }
 0x1b9   : > { %2360 = vmatmul.mubr.bf16.gmra.mxu1 %v3219_v47 }
 0x1ba   : > { %2363 = vmatprep.mubr.bf16.mxu1 %v3222_v48 }
 0x1c1   : > { %2364 = vmatmul.mubr.bf16.gmra.mxu1 %v3227_v49 }
 0x1c2   : > { %2367 = vmatprep.mubr.bf16.mxu1 %v3230_v50 }
 0x1c9   : > { %2368 = vmatmul.mubr.bf16.gmra.mxu1 %v3235_v51 }
 0x1ca   : > { %2419 = vmatprep.mubr.bf16.mxu1 %v3207_v16 }
 0x271   : > { %v2357_v56 = vpop.f32.mrf.mxu1 }
 0x272   : > { %v3245_v59 = vadd.f32 %v2357_v56, %v3242_v57 }
 0x273   : > { %v898_v58 = vpop.f32.mrf.mxu1 }
 0x274   : > { %v3248_v60 = vadd.f32 %v3242_v57, %v898_v58  ;;  %v970_v2 = vmul.f32 %v3253_v61, %v3245_v59 }
 0x275   : > { %v2358_v62 = vpop.f32.mrf.mxu1 }
 0x276   : > { %v3256_v63 = vadd.f32 %v2358_v62, %v3242_v57  ;;  %v968_v0 = vmul.f32 %v3253_v61, %v3248_v60  ;;  %v993_v11 = vadd.f32 %v3267_v4, %v970_v2 }
 0x277   : > { %v901_v1 = vpop.f32.mrf.mxu1 }
 0x278   : > { %v971_v3 = vmul.f32 %v3253_v61, %v3256_v63  ;;  %v3270_v5 = vadd.f32 %v3242_v57, %v901_v1  ;;  %v991_v8 = vadd.f32 %v3267_v4, %v968_v0  ;;  %v1009_v23 = vmax.f32 %v993_v11, 0.0 }
 0x279   : > { %v2361_v6 = vpop.f32.mrf.mxu1 }
 0x27a   : > { %v994_v7 = vadd.f32 %v3267_v4, %v971_v3  ;;  %v969_v9 = vmul.f32 %v3253_v61, %v3270_v5  ;;  %v3278_v12 = vadd.f32 %v2361_v6, %v3242_v57  ;;  %v1007_v19 = vmax.f32 %v991_v8, 0.0 }
 0x27b   : > { %v914_v10 = vpop.f32.mrf.mxu1 }
 0x27c   : > { %v3281_v13 = vadd.f32 %v3242_v57, %v914_v10  ;;  %v992_v14 = vadd.f32 %v3267_v4, %v969_v9  ;;  %v1010_v17 = vmax.f32 %v994_v7, 0.0  ;;  %v974_v24 = vmul.f32 %v3253_v61, %v3278_v12 }
 0x27d   : > { %v2362_v15 = vpop.f32.mrf.mxu1 }
 0x27e   : > { %v972_v18 = vmul.f32 %v3253_v61, %v3281_v13  ;;  %v1008_v20 = vmax.f32 %v992_v14, 0.0  ;;  %v3287_v21 = vadd.f32 %v2362_v15, %v3242_v57  ;;  %v1024_v29 = vpack.c.bf16 %v1010_v17, %v1009_v23 }
 0x27f   : > { %v917_v22 = vpop.f32.mrf.mxu1  ;;  %v997_v34 = vadd.f32 %v3267_v4, %v974_v24 }
 0x280   : > { %v3292_v25 = vadd.f32 %v3242_v57, %v917_v22  ;;  %v975_v26 = vmul.f32 %v3253_v61, %v3287_v21  ;;  %v1023_v28 = vpack.c.bf16 %v1008_v20, %v1007_v19  ;;  %v995_v30 = vadd.f32 %v3267_v4, %v972_v18 }
 0x281   : > { %v2365_v27 = vpop.f32.mrf.mxu1  ;;  %v1013_v52 = vmax.f32 %v997_v34, 0.0 }
 0x282   : > { %v973_v31 = vmul.f32 %v3253_v61, %v3292_v25  ;;  %v998_v32 = vadd.f32 %v3267_v4, %v975_v26  ;;  %2387 = vmatprep.mubr.bf16.mxu0 %v1023_v28  ;;  %v3303_v36 = vadd.f32 %v2365_v27, %v3242_v57  ;;  %v1011_v39 = vmax.f32 %v995_v30, 0.0 }
 0x283   : > { %v930_v33 = vpop.f32.mrf.mxu1  ;;  %2388 = vmatmul.mubr.bf16.vlgmr.msra.gmra.mxu0 %v1024_v29 }
 0x284   : > { %v996_v35 = vadd.f32 %v3267_v4, %v973_v31  ;;  %v3306_v37 = vadd.f32 %v3242_v57, %v930_v33  ;;  %v1014_v40 = vmax.f32 %v998_v32, 0.0  ;;  %v978_v53 = vmul.f32 %v3253_v61, %v3303_v36 }
 0x285   : > { %v2366_v38 = vpop.f32.mrf.mxu1 }
 0x286   : > { %v1012_v41 = vmax.f32 %v996_v35, 0.0  ;;  %v976_v42 = vmul.f32 %v3253_v61, %v3306_v37  ;;  %v3311_v43 = vadd.f32 %v2366_v38, %v3242_v57  ;;  %v1026_v1 = vpack.c.bf16 %v1014_v40, %v1013_v52  ;;  %v2682_v40 = vld [vmem:[#allocation9 + $0x38] sm:$0xff]  }
 0x287   : > { %v933_v44 = vpop.f32.mrf.mxu1  ;;  %v1001_v6 = vadd.f32 %v3267_v4, %v978_v53  ;;  %2435 = vmatprep.subr.bf16.mxu0 %v2682_v40 }
 0x288   : > { %v3316_v54 = vadd.f32 %v3242_v57, %v933_v44  ;;  %v1025_v55 = vpack.c.bf16 %v1012_v41, %v1011_v39  ;;  %v979_v56 = vmul.f32 %v3253_v61, %v3311_v43  ;;  %v999_v62 = vadd.f32 %v3267_v4, %v976_v42  ;;  %v2683_v41 = vld [vmem:[#allocation9 + $0x30] sm:$0xff]   ;;  %2436 = vmatpush3.bf16.msra.mxu0 %v2682_v40  ;;  %v2685_v42 = vld [vmem:[#allocation9 + $0x20] sm:$0xff]  }
 0x289   : > { %v2369_v58 = vpop.f32.mrf.mxu1  ;;  %v1017_v20 = vmax.f32 %v1001_v6, 0.0  ;;  %2437 = vmatprep.subr.bf16.mxu0 %v2683_v41 }
 0x28a   : > { %v977_v0 = vmul.f32 %v3253_v61, %v3316_v54  ;;  %2391 = vmatprep.mubr.bf16.mxu0 %v1025_v55  ;;  %v1002_v2 = vadd.f32 %v3267_v4, %v979_v56  ;;  %v3327_v8 = vadd.f32 %v2369_v58, %v3242_v57  ;;  %v1015_v11 = vmax.f32 %v999_v62, 0.0 }
 0x28b   : > { %v946_v3 = vpop.f32.mrf.mxu1  ;;  %2392 = vmatmul.mubr.bf16.gmra.mxu0 %v1026_v1 }
 0x28c   : > { %v1000_v7 = vadd.f32 %v3267_v4, %v977_v0  ;;  %v3330_v9 = vadd.f32 %v3242_v57, %v946_v3  ;;  %v1018_v14 = vmax.f32 %v1002_v2, 0.0  ;;  %v982_v22 = vmul.f32 %v3253_v61, %v3327_v8  ;;  %2438 = vmatpush3.bf16.msra.mxu0 %v2683_v41 }
 0x28d   : > { %v2370_v10 = vpop.f32.mrf.mxu1 }
 0x28e   : > { %v1016_v15 = vmax.f32 %v1000_v7, 0.0  ;;  %v980_v17 = vmul.f32 %v3253_v61, %v3330_v9  ;;  %v3335_v18 = vadd.f32 %v2370_v10, %v3242_v57  ;;  %v1028_v29 = vpack.c.bf16 %v1018_v14, %v1017_v20 }
 0x28f   : > { %v949_v19 = vpop.f32.mrf.mxu1  ;;  %v1005_v31 = vadd.f32 %v3267_v4, %v982_v22 }
 0x290   : > { %v3340_v23 = vadd.f32 %v3242_v57, %v949_v19  ;;  %v1027_v24 = vpack.c.bf16 %v1016_v15, %v1015_v11  ;;  %v983_v26 = vmul.f32 %v3253_v61, %v3335_v18  ;;  %v1003_v27 = vadd.f32 %v3267_v4, %v980_v17 }
 0x291   : > { %v1021_v35 = vmax.f32 %v1005_v31, 0.0 }
 0x292   : > { %v981_v28 = vmul.f32 %v3253_v61, %v3340_v23  ;;  %2395 = vmatprep.mubr.bf16.mxu0 %v1027_v24  ;;  %v1006_v30 = vadd.f32 %v3267_v4, %v983_v26  ;;  %v1019_v57 = vmax.f32 %v1003_v27, 0.0  ;;  %v2684_v61 = vld [vmem:[#allocation9 + $0x28] sm:$0xff]   ;;  %v2686_v27 = vld [vmem:[#allocation9 + $0x18] sm:$0xff]  }
 0x293   : > { %2396 = vmatmul.mubr.bf16.gmra.mxu0 %v1028_v29  ;;  %2439 = vmatprep.subr.bf16.mxu0 %v2684_v61  ;;  %v2688_v29 = vld [vmem:[#allocation9 + $0x8] sm:$0xff]  }
 0x294   : > { %v1004_v32 = vadd.f32 %v3267_v4, %v981_v28  ;;  %v1022_v33 = vmax.f32 %v1006_v30, 0.0  ;;  %2440 = vmatpush3.bf16.msra.mxu0 %v2684_v61  ;;  %v2687_v28 = vld [vmem:[#allocation9 + $0x10] sm:$0xff]   ;;  %v2689_v30 = vld [vmem:[#allocation9] sm:$0xff]  }
 0x295   : > { %2441 = vmatprep.subr.bf16.mxu0 %v2685_v42 }
 0x296   : > { %v1020_v34 = vmax.f32 %v1004_v32, 0.0  ;;  %v1030_v39 = vpack.c.bf16 %v1022_v33, %v1021_v35  ;;  %v3361_v32 = vld [vmem:[%s3501_s10] ss:$0 sm:$0xff] }
 0x298   : > { %v1029_v38 = vpack.c.bf16 %v1020_v34, %v1019_v57  ;;  %2442 = vmatpush3.bf16.msra.mxu0 %v2685_v42 }
 0x299   : > { %2443 = vmatprep.subr.bf16.mxu0 %v2686_v27 }
 0x29a   : > { %2399 = vmatprep.mubr.bf16.mxu0 %v1029_v38  ;;  %v3368_v38 = vld [vmem:[%s3503_s12] ss:$0 sm:$0xff] }
 0x29b   : > { %2400 = vmatmul.mubr.bf16.gmra.mxu0 %v1030_v39 }
 0x29c   : > { %2444 = vmatpush3.bf16.msra.mxu0 %v2686_v27 }
 0x29d   : > { %2445 = vmatprep.subr.bf16.mxu0 %v2687_v28 }
 0x2a0   : > { %2446 = vmatpush3.bf16.msra.mxu0 %v2687_v28 }
 0x2a1   : > { %2447 = vmatprep.subr.bf16.mxu0 %v2688_v29 }
 0x2a4   : > { %2448 = vmatpush3.bf16.msra.mxu0 %v2688_v29 }
 0x2a5   : > { %2449 = vmatprep.subr.bf16.mxu0 %v2689_v30 }
 0x2a8   : > { %2450 = vmatpush3.bf16.msra.mxu0 %v2689_v30 }
 0x343   : > { %v2389_v4 = vpop.f32.mrf.mxu0 }
 0x345   : > { %v1129_v44 = vpop.f32.mrf.mxu0 }
 0x347   : > { %v2390_v52 = vpop.f32.mrf.mxu0 }
 0x348   : > { %v1193_v24 = vpack.c.bf16 %v2390_v52, %v2389_v4 }
 0x349   : > { %v1132_v53 = vpop.f32.mrf.mxu0 }
 0x34a   : > { %v1192_v26 = vpack.c.bf16 %v1132_v53, %v1129_v44 }
 0x34b   : > { %v2393_v55 = vpop.f32.mrf.mxu0 }
 0x34d   : > { %v1145_v56 = vpop.f32.mrf.mxu0 }
 0x34f   : > { %v2394_v58 = vpop.f32.mrf.mxu0 }
 0x350   : > { %v1195_v20 = vpack.c.bf16 %v2394_v58, %v2393_v55 }
 0x351   : > { %v1148_v62 = vpop.f32.mrf.mxu0 }
 0x352   : > { %v1194_v22 = vpack.c.bf16 %v1148_v62, %v1145_v56 }
 0x353   : > { %v2397_v0 = vpop.f32.mrf.mxu0 }
 0x355   : > { %v1161_v1 = vpop.f32.mrf.mxu0 }
 0x357   : > { %v2398_v2 = vpop.f32.mrf.mxu0 }
 0x358   : > { %v1197_v17 = vpack.c.bf16 %v2398_v2, %v2397_v0 }
 0x359   : > { %v1164_v3 = vpop.f32.mrf.mxu0 }
 0x35a   : > { %v1196_v19 = vpack.c.bf16 %v1164_v3, %v1161_v1 }
 0x35b   : > { %v2401_v6 = vpop.f32.mrf.mxu0 }
 0x35d   : > { %v1177_v7 = vpop.f32.mrf.mxu0 }
 0x35f   : > { %v2402_v10 = vpop.f32.mrf.mxu0 }
 0x360   : > { %v1199_v11 = vpack.c.bf16 %v2402_v10, %v2401_v6 }
 0x361   : > { %v1180_v14 = vpop.f32.mrf.mxu0 }
 0x362   : > { %v1198_v15 = vpack.c.bf16 %v1180_v14, %v1177_v7  ;;  %2403 = vmatprep.subr.bf16.mxu1 %v1199_v11 }
 0x363   : > { %2404 = vmatpush3.bf16.msra.mxu1 %v1199_v11 }
 0x364   : > { %2405 = vmatprep.subr.bf16.mxu1 %v1198_v15 }
 0x367   : > { %2406 = vmatpush3.bf16.msra.mxu1 %v1198_v15 }
 0x368   : > { %2407 = vmatprep.subr.bf16.mxu1 %v1197_v17 }
 0x36b   : > { %2408 = vmatpush3.bf16.msra.mxu1 %v1197_v17 }
 0x36c   : > { %2409 = vmatprep.subr.bf16.mxu1 %v1196_v19 }
 0x36f   : > { %2410 = vmatpush3.bf16.msra.mxu1 %v1196_v19 }
 0x370   : > { %2411 = vmatprep.subr.bf16.mxu1 %v1195_v20 }
 0x373   : > { %2412 = vmatpush3.bf16.msra.mxu1 %v1195_v20 }
 0x374   : > { %2413 = vmatprep.subr.bf16.mxu1 %v1194_v22 }
 0x377   : > { %2414 = vmatpush3.bf16.msra.mxu1 %v1194_v22 }
 0x378   : > { %2415 = vmatprep.subr.bf16.mxu1 %v1193_v24 }
 0x37b   : > { %2416 = vmatpush3.bf16.msra.mxu1 %v1193_v24 }
 0x37c   : > { %2417 = vmatprep.subr.bf16.mxu1 %v1192_v26 }
 0x37f   : > { %2418 = vmatpush3.bf16.msra.mxu1 %v1192_v26 }
 0x382   : > { %2420 = vmatmul.mubr.bf16.vlgmr.msra.gmra.mxu1 %v3211_v45 }
 0x383   : > { %2423 = vmatprep.mubr.bf16.mxu1 %v3214_v46 }
 0x38a   : > { %2424 = vmatmul.mubr.bf16.gmra.mxu1 %v3219_v47 }
 0x38b   : > { %2427 = vmatprep.mubr.bf16.mxu1 %v3222_v48 }
 0x392   : > { %2428 = vmatmul.mubr.bf16.gmra.mxu1 %v3227_v49 }
 0x393   : > { %2431 = vmatprep.mubr.bf16.mxu1 %v3230_v50 }
 0x39a   : > { %2432 = vmatmul.mubr.bf16.gmra.mxu1 %v3235_v51 }
 0x39b   : > { %2483 = vmatprep.mubr.bf16.mxu1 %v3207_v16 }
 0x442   : > { %v2421_v31 = vpop.f32.mrf.mxu1 }
 0x443   : > { %v1306_v34 = vmul.f32 %v2421_v31, %v3361_v32 }
 0x444   : > { %v1234_v57 = vpop.f32.mrf.mxu1 }
 0x445   : > { %v1304_v33 = vmul.f32 %v3361_v32, %v1234_v57  ;;  %v1329_v4 = vadd.f32 %v3368_v38, %v1306_v34 }
 0x446   : > { %v2422_v35 = vpop.f32.mrf.mxu1 }
 0x447   : > { %v1307_v39 = vmul.f32 %v2422_v35, %v3361_v32  ;;  %v1327_v41 = vadd.f32 %v3368_v38, %v1304_v33  ;;  %v1345_v0 = vmax.f32 %v1329_v4, 0.0 }
 0x448   : > { %v1237_v40 = vpop.f32.mrf.mxu1 }
 0x449   : > { %v1330_v61 = vadd.f32 %v3368_v38, %v1307_v39  ;;  %v1305_v42 = vmul.f32 %v3361_v32, %v1237_v40  ;;  %v1343_v56 = vmax.f32 %v1327_v41, 0.0 }
 0x44a   : > { %v2425_v44 = vpop.f32.mrf.mxu1 }
 0x44b   : > { %v1328_v52 = vadd.f32 %v3368_v38, %v1305_v42  ;;  %v1346_v53 = vmax.f32 %v1330_v61, 0.0  ;;  %v1310_v1 = vmul.f32 %v2425_v44, %v3361_v32 }
 0x44c   : > { %v1250_v55 = vpop.f32.mrf.mxu1 }
 0x44d   : > { %v1344_v58 = vmax.f32 %v1328_v52, 0.0  ;;  %v1308_v62 = vmul.f32 %v3361_v32, %v1250_v55  ;;  %v1360_v7 = vpack.c.bf16 %v1346_v53, %v1345_v0  ;;  %v1333_v17 = vadd.f32 %v3368_v38, %v1310_v1 }
 0x44e   : > { %v2426_v2 = vpop.f32.mrf.mxu1 }
 0x44f   : > { %v1311_v3 = vmul.f32 %v2426_v2, %v3361_v32  ;;  %v1359_v6 = vpack.c.bf16 %v1344_v58, %v1343_v56  ;;  %v1331_v11 = vadd.f32 %v3368_v38, %v1308_v62  ;;  %v1349_v29 = vmax.f32 %v1333_v17, 0.0 }
 0x450   : > { %v1253_v10 = vpop.f32.mrf.mxu1 }
 0x451   : > { %v1334_v14 = vadd.f32 %v3368_v38, %v1311_v3  ;;  %v1309_v15 = vmul.f32 %v3361_v32, %v1253_v10  ;;  %2451 = vmatprep.mubr.bf16.mxu0 %v1359_v6  ;;  %v1347_v26 = vmax.f32 %v1331_v11, 0.0 }
 0x452   : > { %v2429_v19 = vpop.f32.mrf.mxu1  ;;  %2452 = vmatmul.mubr.bf16.vlgmr.msra.gmra.mxu0 %v1360_v7 }
 0x453   : > { %v1332_v20 = vadd.f32 %v3368_v38, %v1309_v15  ;;  %v1350_v22 = vmax.f32 %v1334_v14, 0.0  ;;  %v1314_v30 = vmul.f32 %v2429_v19, %v3361_v32 }
 0x454   : > { %v1266_v24 = vpop.f32.mrf.mxu1 }
 0x455   : > { %v1348_v27 = vmax.f32 %v1332_v20, 0.0  ;;  %v1312_v28 = vmul.f32 %v3361_v32, %v1266_v24  ;;  %v1362_v35 = vpack.c.bf16 %v1350_v22, %v1349_v29  ;;  %v1337_v61 = vadd.f32 %v3368_v38, %v1314_v30  ;;  %v2693_v29 = vld [vmem:[#allocation10 + $0x20] sm:$0xff]  }
 0x456   : > { %v2430_v31 = vpop.f32.mrf.mxu1 }
 0x457   : > { %v1315_v57 = vmul.f32 %v2430_v31, %v3361_v32  ;;  %v1361_v33 = vpack.c.bf16 %v1348_v27, %v1347_v26  ;;  %v1335_v39 = vadd.f32 %v3368_v38, %v1312_v28  ;;  %v1353_v58 = vmax.f32 %v1337_v61, 0.0  ;;  %v2690_v27 = vld [vmem:[#allocation10 + $0x38] sm:$0xff]   ;;  %v2691_v28 = vld [vmem:[#allocation10 + $0x30] sm:$0xff]  }
 0x458   : > { %v1269_v34 = vpop.f32.mrf.mxu1  ;;  %2499 = vmatprep.subr.bf16.mxu0 %v2690_v27 }
 0x459   : > { %v1338_v40 = vadd.f32 %v3368_v38, %v1315_v57  ;;  %v1313_v41 = vmul.f32 %v3361_v32, %v1269_v34  ;;  %2455 = vmatprep.mubr.bf16.mxu0 %v1361_v33  ;;  %v1351_v53 = vmax.f32 %v1335_v39, 0.0  ;;  %2500 = vmatpush3.bf16.msra.mxu0 %v2690_v27  ;;  %v1640_v27 = vmul.f32 0.5, %v3248_v60 }
 0x45a   : > { %v2433_v42 = vpop.f32.mrf.mxu1  ;;  %2456 = vmatmul.mubr.bf16.gmra.mxu0 %v1362_v35  ;;  %2501 = vmatprep.subr.bf16.mxu0 %v2691_v28  ;;  %v1647_v60 = vmul.f32 0.5, %v3287_v21 }
 0x45b   : > { %v1336_v4 = vadd.f32 %v3368_v38, %v1313_v41  ;;  %v1354_v44 = vmax.f32 %v1338_v40, 0.0  ;;  %v1318_v62 = vmul.f32 %v2433_v42, %v3361_v32 }
 0x45c   : > { %v1282_v52 = vpop.f32.mrf.mxu1 }
 0x45d   : > { %v1352_v55 = vmax.f32 %v1336_v4, 0.0  ;;  %v1316_v56 = vmul.f32 %v3361_v32, %v1282_v52  ;;  %v1364_v6 = vpack.c.bf16 %v1354_v44, %v1353_v58  ;;  %v1341_v14 = vadd.f32 %v3368_v38, %v1318_v62  ;;  %2502 = vmatpush3.bf16.msra.mxu0 %v2691_v28 }
 0x45e   : > { %v2434_v0 = vpop.f32.mrf.mxu1 }
 0x45f   : > { %v1319_v1 = vmul.f32 %v2434_v0, %v3361_v32  ;;  %v1363_v2 = vpack.c.bf16 %v1352_v55, %v1351_v53  ;;  %v1339_v7 = vadd.f32 %v3368_v38, %v1316_v56  ;;  %v1357_v22 = vmax.f32 %v1341_v14, 0.0 }
 0x460   : > { %v1285_v3 = vpop.f32.mrf.mxu1 }
 0x461   : > { %v1342_v10 = vadd.f32 %v3368_v38, %v1319_v1  ;;  %v1317_v11 = vmul.f32 %v3361_v32, %v1285_v3  ;;  %2459 = vmatprep.mubr.bf16.mxu0 %v1363_v2  ;;  %v1355_v19 = vmax.f32 %v1339_v7, 0.0  ;;  %v2692_v32 = vld [vmem:[#allocation10 + $0x28] sm:$0xff]   ;;  %v2695_v7 = vld [vmem:[#allocation10 + $0x10] sm:$0xff]  }
 0x462   : > { %2460 = vmatmul.mubr.bf16.gmra.mxu0 %v1364_v6  ;;  %2503 = vmatprep.subr.bf16.mxu0 %v2692_v32 }
 0x463   : > { %v1340_v15 = vadd.f32 %v3368_v38, %v1317_v11  ;;  %v1358_v17 = vmax.f32 %v1342_v10, 0.0  ;;  %2504 = vmatpush3.bf16.msra.mxu0 %v2692_v32  ;;  %v2694_v38 = vld [vmem:[#allocation10 + $0x18] sm:$0xff]   ;;  %v2696_v10 = vld [vmem:[#allocation10 + $0x8] sm:$0xff]   ;;  %v2697_v11 = vld [vmem:[#allocation10] sm:$0xff]   ;;  %v1641_v32 = vmul.f32 0.5, %v3270_v5 }
 0x464   : > { %2505 = vmatprep.subr.bf16.mxu0 %v2693_v29 }
 0x465   : > { %v1356_v20 = vmax.f32 %v1340_v15, 0.0  ;;  %v1366_v26 = vpack.c.bf16 %v1358_v17, %v1357_v22  ;;  %v3411_v15 = vld [vmem:[%s3498_s7] ss:$0 sm:$0xff]  ;;  %v1643_v22 = vmul.f32 0.5, %v3256_v63 }
 0x467   : > { %v1365_v24 = vpack.c.bf16 %v1356_v20, %v1355_v19  ;;  %2506 = vmatpush3.bf16.msra.mxu0 %v2693_v29 }
 0x468   : > { %2507 = vmatprep.subr.bf16.mxu0 %v2694_v38 }
 0x469   : > { %2463 = vmatprep.mubr.bf16.mxu0 %v1365_v24 }
 0x46a   : > { %2464 = vmatmul.mubr.bf16.gmra.mxu0 %v1366_v26 }
 0x46b   : > { %2508 = vmatpush3.bf16.msra.mxu0 %v2694_v38 }
 0x46c   : > { %2509 = vmatprep.subr.bf16.mxu0 %v2695_v7 }
 0x46f   : > { %2510 = vmatpush3.bf16.msra.mxu0 %v2695_v7 }
 0x470   : > { %2511 = vmatprep.subr.bf16.mxu0 %v2696_v10 }
 0x473   : > { %2512 = vmatpush3.bf16.msra.mxu0 %v2696_v10  ;;  %v1649_v10 = vmul.f32 0.5, %v3316_v54 }
 0x474   : > { %2513 = vmatprep.subr.bf16.mxu0 %v2697_v11 }
 0x477   : > { %2514 = vmatpush3.bf16.msra.mxu0 %v2697_v11 }
 0x512   : > { %v2453_v30 = vpop.f32.mrf.mxu0 }
 0x514   : > { %v1465_v31 = vpop.f32.mrf.mxu0 }
 0x516   : > { %v2454_v57 = vpop.f32.mrf.mxu0 }
 0x517   : > { %v1529_v3 = vpack.c.bf16 %v2454_v57, %v2453_v30 }
 0x518   : > { %v1468_v33 = vpop.f32.mrf.mxu0 }
 0x519   : > { %v1528_v6 = vpack.c.bf16 %v1468_v33, %v1465_v31 }
 0x51a   : > { %v2457_v34 = vpop.f32.mrf.mxu0 }
 0x51c   : > { %v1481_v35 = vpop.f32.mrf.mxu0 }
 0x51e   : > { %v2458_v39 = vpop.f32.mrf.mxu0 }
 0x51f   : > { %v1531_v1 = vpack.c.bf16 %v2458_v39, %v2457_v34 }
 0x520   : > { %v1484_v40 = vpop.f32.mrf.mxu0 }
 0x521   : > { %v1530_v2 = vpack.c.bf16 %v1484_v40, %v1481_v35  ;;  %v1646_v40 = vmul.f32 0.5, %v3278_v12 }
 0x522   : > { %v2461_v41 = vpop.f32.mrf.mxu0 }
 0x524   : > { %v1497_v61 = vpop.f32.mrf.mxu0 }
 0x526   : > { %v2462_v42 = vpop.f32.mrf.mxu0 }
 0x527   : > { %v1533_v62 = vpack.c.bf16 %v2462_v42, %v2461_v41 }
 0x528   : > { %v1500_v4 = vpop.f32.mrf.mxu0 }
 0x529   : > { %v1532_v0 = vpack.c.bf16 %v1500_v4, %v1497_v61  ;;  %v1644_v61 = vmul.f32 0.5, %v3281_v13  ;;  %v1645_v4 = vmul.f32 0.5, %v3292_v25  ;;  %v1651_v13 = vmul.f32 0.5, %v3311_v43 }
 0x52a   : > { %v2465_v44 = vpop.f32.mrf.mxu0 }
 0x52c   : > { %v1513_v52 = vpop.f32.mrf.mxu0 }
 0x52e   : > { %v2466_v53 = vpop.f32.mrf.mxu0 }
 0x52f   : > { %v1535_v55 = vpack.c.bf16 %v2466_v53, %v2465_v44 }
 0x530   : > { %v1516_v56 = vpop.f32.mrf.mxu0 }
 0x531   : > { %v1534_v58 = vpack.c.bf16 %v1516_v56, %v1513_v52  ;;  %2467 = vmatprep.subr.bf16.mxu1 %v1535_v55 }
 0x532   : > { %2468 = vmatpush3.bf16.msra.mxu1 %v1535_v55 }
 0x533   : > { %2469 = vmatprep.subr.bf16.mxu1 %v1534_v58 }
 0x536   : > { %2470 = vmatpush3.bf16.msra.mxu1 %v1534_v58 }
 0x537   : > { %2471 = vmatprep.subr.bf16.mxu1 %v1533_v62 }
 0x53a   : > { %2472 = vmatpush3.bf16.msra.mxu1 %v1533_v62 }
 0x53b   : > { %2473 = vmatprep.subr.bf16.mxu1 %v1532_v0 }
 0x53e   : > { %2474 = vmatpush3.bf16.msra.mxu1 %v1532_v0 }
 0x53f   : > { %2475 = vmatprep.subr.bf16.mxu1 %v1531_v1 }
 0x542   : > { %2476 = vmatpush3.bf16.msra.mxu1 %v1531_v1 }
 0x543   : > { %2477 = vmatprep.subr.bf16.mxu1 %v1530_v2 }
 0x546   : > { %2478 = vmatpush3.bf16.msra.mxu1 %v1530_v2  ;;  %v1650_v2 = vmul.f32 0.5, %v3303_v36 }
 0x547   : > { %2479 = vmatprep.subr.bf16.mxu1 %v1529_v3 }
 0x54a   : > { %2480 = vmatpush3.bf16.msra.mxu1 %v1529_v3 }
 0x54b   : > { %2481 = vmatprep.subr.bf16.mxu1 %v1528_v6 }
 0x54e   : > { %2482 = vmatpush3.bf16.msra.mxu1 %v1528_v6  ;;  %v1648_v6 = vmul.f32 0.5, %v3306_v37  ;;  %v1655_v37 = vmul.f32 0.5, %v3335_v18 }
 0x551   : > { %2484 = vmatmul.mubr.bf16.vlgmr.msra.gmra.mxu1 %v3211_v45 }
 0x552   : > { %2487 = vmatprep.mubr.bf16.mxu1 %v3214_v46 }
 0x559   : > { %2488 = vmatmul.mubr.bf16.gmra.mxu1 %v3219_v47 }
 0x55a   : > { %2491 = vmatprep.mubr.bf16.mxu1 %v3222_v48 }
 0x561   : > { %2492 = vmatmul.mubr.bf16.gmra.mxu1 %v3227_v49 }
 0x562   : > { %2495 = vmatprep.mubr.bf16.mxu1 %v3230_v50 }
 0x569   : > { %2496 = vmatmul.mubr.bf16.gmra.mxu1 %v3235_v51 }
 0x56a   : > { %2547 = vmatprep.mubr.bf16.mxu1 %v3207_v16  ;;  %v1642_v16 = vmul.f32 0.5, %v3245_v59 }
 0x611   : > { %v2485_v14 = vpop.f32.mrf.mxu1 }
 0x612   : > { %v1586_v19 = vadd.f32 %v2485_v14, %v3411_v15 }
 0x613   : > { %v1577_v17 = vpop.f32.mrf.mxu1 }
 0x614   : > { %v1578_v24 = vadd.f32 %v3411_v15, %v1577_v17  ;;  %v1658_v29 = vadd.f32 %v1642_v16, %v1586_v19 }
 0x615   : > { %v2486_v20 = vpop.f32.mrf.mxu1 }
 0x616   : > { %v1589_v26 = vadd.f32 %v2486_v20, %v3411_v15  ;;  %v1656_v57 = vadd.f32 %v1640_v27, %v1578_v24  ;;  %v1654_v27 = vmul.f32 0.5, %v3327_v8 }
 0x617   : > { %v1580_v28 = vpop.f32.mrf.mxu1 }
 0x618   : > { %v1659_v38 = vadd.f32 %v1643_v22, %v1589_v26  ;;  %v1581_v30 = vadd.f32 %v3411_v15, %v1580_v28 }
 0x619   : > { %v2489_v31 = vpop.f32.mrf.mxu1 }
 0x61a   : > { %v1673_v33 = vpack.c.bf16 %v1659_v38, %v1658_v29  ;;  %v1657_v34 = vadd.f32 %v1641_v32, %v1581_v30  ;;  %v1602_v63 = vadd.f32 %v2489_v31, %v3411_v15  ;;  %v1652_v32 = vmul.f32 0.5, %v3330_v9 }
 0x61b   : > { %v1593_v59 = vpop.f32.mrf.mxu1  ;;  %v1653_v38 = vmul.f32 0.5, %v3340_v23 }
 0x61c   : > { %v1672_v35 = vpack.c.bf16 %v1657_v34, %v1656_v57  ;;  %v1594_v41 = vadd.f32 %v3411_v15, %v1593_v59  ;;  %v1662_v44 = vadd.f32 %v1646_v40, %v1602_v63 }
 0x61d   : > { %v2490_v39 = vpop.f32.mrf.mxu1 }
 0x61e   : > { %v1605_v5 = vadd.f32 %v2490_v39, %v3411_v15  ;;  %2515 = vmatprep.mubr.bf16.mxu0 %v1672_v35  ;;  %v1660_v56 = vadd.f32 %v1644_v61, %v1594_v41 }
 0x61f   : > { %v1596_v42 = vpop.f32.mrf.mxu1  ;;  %2516 = vmatmul.mubr.bf16.vlgmr.msra.gmra.mxu0 %v1673_v33 }
 0x620   : > { %v1663_v52 = vadd.f32 %v1647_v60, %v1605_v5  ;;  %v1597_v53 = vadd.f32 %v3411_v15, %v1596_v42 }
 0x621   : > { %v2493_v55 = vpop.f32.mrf.mxu1 }
 0x622   : > { %v1661_v12 = vadd.f32 %v1645_v4, %v1597_v53  ;;  %v1675_v58 = vpack.c.bf16 %v1663_v52, %v1662_v44  ;;  %v1618_v62 = vadd.f32 %v2493_v55, %v3411_v15 }
 0x623   : > { %v1609_v21 = vpop.f32.mrf.mxu1 }
 0x624   : > { %v1674_v0 = vpack.c.bf16 %v1661_v12, %v1660_v56  ;;  %v1610_v3 = vadd.f32 %v3411_v15, %v1609_v21  ;;  %v1666_v11 = vadd.f32 %v1650_v2, %v1618_v62 }
 0x625   : > { %v2494_v1 = vpop.f32.mrf.mxu1 }
 0x626   : > { %v1621_v25 = vadd.f32 %v2494_v1, %v3411_v15  ;;  %2519 = vmatprep.mubr.bf16.mxu0 %v1674_v0  ;;  %v1664_v20 = vadd.f32 %v1648_v6, %v1610_v3  ;;  %v2173_v1 = vld [vmem:[%s3499_s8] ss:$0 sm:$0xff] }
 0x627   : > { %v1612_v7 = vpop.f32.mrf.mxu1  ;;  %2520 = vmatmul.mubr.bf16.gmra.mxu0 %v1675_v58 }
 0x628   : > { %v1667_v14 = vadd.f32 %v1651_v13, %v1621_v25  ;;  %v1613_v17 = vadd.f32 %v3411_v15, %v1612_v7 }
 0x629   : > { %v2497_v19 = vpop.f32.mrf.mxu1 }
 0x62a   : > { %v1665_v36 = vadd.f32 %v1649_v10, %v1613_v17  ;;  %v1677_v16 = vpack.c.bf16 %v1667_v14, %v1666_v11  ;;  %v1634_v22 = vadd.f32 %v2497_v19, %v3411_v15 }
 0x62b   : > { %v1625_v43 = vpop.f32.mrf.mxu1 }
 0x62c   : > { %v1676_v24 = vpack.c.bf16 %v1665_v36, %v1664_v20  ;;  %v1626_v28 = vadd.f32 %v3411_v15, %v1625_v43  ;;  %v1670_v30 = vadd.f32 %v1654_v27, %v1634_v22 }
 0x62d   : > { %v2498_v26 = vpop.f32.mrf.mxu1 }
 0x62e   : > { %v1637_v54 = vadd.f32 %v2498_v26, %v3411_v15  ;;  %2523 = vmatprep.mubr.bf16.mxu0 %v1676_v24  ;;  %v1668_v33 = vadd.f32 %v1652_v32, %v1626_v28 }
 0x62f   : > { %v1628_v29 = vpop.f32.mrf.mxu1  ;;  %2524 = vmatmul.mubr.bf16.gmra.mxu0 %v1677_v16 }
 0x630   : > { %v1671_v31 = vadd.f32 %v1655_v37, %v1637_v54  ;;  %v1629_v57 = vadd.f32 %v3411_v15, %v1628_v29 }
 0x632   : > { %v1669_v34 = vadd.f32 %v1653_v38, %v1629_v57  ;;  %v1679_v8 = vpack.c.bf16 %v1671_v31, %v1670_v30 }
 0x634   : > { %v1678_v59 = vpack.c.bf16 %v1669_v34, %v1668_v33 }
 0x636   : > { %2527 = vmatprep.mubr.bf16.mxu0 %v1678_v59 }
 0x637   : > { %2528 = vmatmul.mubr.bf16.gmra.mxu0 %v1679_v8 }
 0x6df   : > { %v2517_v18 = vpop.f32.mrf.mxu0 }
 0x6e1   : > { %v1778_v63 = vpop.f32.mrf.mxu0 }
 0x6e3   : > { %v2518_v35 = vpop.f32.mrf.mxu0 }
 0x6e4   : > { %v1842_v62 = vpack.c.bf16 %v2518_v35, %v2517_v18 }
 0x6e5   : > { %v1781_v39 = vpop.f32.mrf.mxu0 }
 0x6e6   : > { %v1841_v0 = vpack.c.bf16 %v1781_v39, %v1778_v63 }
 0x6e7   : > { %v2521_v40 = vpop.f32.mrf.mxu0 }
 0x6e9   : > { %v1794_v9 = vpop.f32.mrf.mxu0 }
 0x6eb   : > { %v2522_v60 = vpop.f32.mrf.mxu0 }
 0x6ec   : > { %v1844_v58 = vpack.c.bf16 %v2522_v60, %v2521_v40 }
 0x6ed   : > { %v1797_v41 = vpop.f32.mrf.mxu0 }
 0x6ee   : > { %v1843_v21 = vpack.c.bf16 %v1797_v41, %v1794_v9 }
 0x6ef   : > { %v2525_v5 = vpop.f32.mrf.mxu0 }
 0x6f1   : > { %v1810_v23 = vpop.f32.mrf.mxu0 }
 0x6f3   : > { %v2526_v61 = vpop.f32.mrf.mxu0 }
 0x6f4   : > { %v1846_v56 = vpack.c.bf16 %v2526_v61, %v2525_v5 }
 0x6f5   : > { %v1813_v42 = vpop.f32.mrf.mxu0 }
 0x6f6   : > { %v1845_v12 = vpack.c.bf16 %v1813_v42, %v1810_v23 }
 0x6f7   : > { %v2529_v4 = vpop.f32.mrf.mxu0 }
 0x6f9   : > { %v1826_v15 = vpop.f32.mrf.mxu0 }
 0x6fb   : > { %v2530_v44 = vpop.f32.mrf.mxu0 }
 0x6fc   : > { %v1848_v52 = vpack.c.bf16 %v2530_v44, %v2529_v4 }
 0x6fd   : > { %v1829_v53 = vpop.f32.mrf.mxu0 }
 0x6fe   : > { %v1847_v55 = vpack.c.bf16 %v1829_v53, %v1826_v15  ;;  %2531 = vmatprep.subr.bf16.mxu1 %v1848_v52 }
 0x6ff   : > { %2532 = vmatpush3.bf16.msra.mxu1 %v1848_v52 }
 0x700   : > { %2533 = vmatprep.subr.bf16.mxu1 %v1847_v55 }
 0x703   : > { %2534 = vmatpush3.bf16.msra.mxu1 %v1847_v55 }
 0x704   : > { %2535 = vmatprep.subr.bf16.mxu1 %v1846_v56 }
 0x707   : > { %2536 = vmatpush3.bf16.msra.mxu1 %v1846_v56 }
 0x708   : > { %2537 = vmatprep.subr.bf16.mxu1 %v1845_v12 }
 0x70b   : > { %2538 = vmatpush3.bf16.msra.mxu1 %v1845_v12 }
 0x70c   : > { %2539 = vmatprep.subr.bf16.mxu1 %v1844_v58 }
 0x70f   : > { %2540 = vmatpush3.bf16.msra.mxu1 %v1844_v58 }
 0x710   : > { %2541 = vmatprep.subr.bf16.mxu1 %v1843_v21 }
 0x713   : > { %2542 = vmatpush3.bf16.msra.mxu1 %v1843_v21 }
 0x714   : > { %2543 = vmatprep.subr.bf16.mxu1 %v1842_v62 }
 0x717   : > { %2544 = vmatpush3.bf16.msra.mxu1 %v1842_v62 }
 0x718   : > { %2545 = vmatprep.subr.bf16.mxu1 %v1841_v0 }
 0x71b   : > { %2546 = vmatpush3.bf16.msra.mxu1 %v1841_v0 }
 0x71e   : > { %2548 = vmatmul.mubr.bf16.vlgmr.msra.gmra.mxu1 %v3211_v45 }
 0x71f   : > { %2551 = vmatprep.mubr.bf16.mxu1 %v3214_v46 }
 0x726   : > { %2552 = vmatmul.mubr.bf16.gmra.mxu1 %v3219_v47 }
 0x727   : > { %2555 = vmatprep.mubr.bf16.mxu1 %v3222_v48 }
 0x72e   : > { %2556 = vmatmul.mubr.bf16.gmra.mxu1 %v3227_v49 }
 0x72f   : > { %2559 = vmatprep.mubr.bf16.mxu1 %v3230_v50 }
 0x736   : > { %2560 = vmatmul.mubr.bf16.gmra.mxu1 %v3235_v51 }
 0x7de   : > { %v2549_v45 = vpop.f32.mrf.mxu1 }
 0x7df   : > { %v1899_v46 = vadd.f32 %v2549_v45, %v2173_v1 }
 0x7e0   : > { %v1890_v47 = vpop.f32.mrf.mxu1 }
 0x7e1   : > { %1955 = vst [vmem:[%s3460_s24 + $0x10] sm:$0xff] %v1899_v46  ;;  %v1891_v48 = vadd.f32 %v2173_v1, %v1890_v47 }
 0x7e2   : > { %v2550_v49 = vpop.f32.mrf.mxu1 }
 0x7e3   : > { %1953 = vst [vmem:[%s3460_s24] sm:$0xff] %v1891_v48  ;;  %v1902_v50 = vadd.f32 %v2550_v49, %v2173_v1 }
 0x7e4   : > { %v1893_v51 = vpop.f32.mrf.mxu1 }
 0x7e5   : > { %1956 = vst [vmem:[%s3460_s24 + $0x18] sm:$0xff] %v1902_v50  ;;  %v1894_v2 = vadd.f32 %v2173_v1, %v1893_v51 }
 0x7e6   : > { %v2553_v13 = vpop.f32.mrf.mxu1 }
 0x7e7   : > { %1954 = vst [vmem:[%s3460_s24 + $0x8] sm:$0xff] %v1894_v2  ;;  %v1915_v3 = vadd.f32 %v2553_v13, %v2173_v1 }
 0x7e8   : > { %v1906_v25 = vpop.f32.mrf.mxu1 }
 0x7e9   : > { %1959 = vst [vmem:[%s3460_s24 + $0x30] sm:$0xff] %v1915_v3  ;;  %v1907_v6 = vadd.f32 %v2173_v1, %v1906_v25 }
 0x7ea   : > { %v2554_v7 = vpop.f32.mrf.mxu1 }
 0x7eb   : > { %1957 = vst [vmem:[%s3460_s24 + $0x20] sm:$0xff] %v1907_v6  ;;  %v1918_v10 = vadd.f32 %v2554_v7, %v2173_v1 }
 0x7ec   : > { %v1909_v11 = vpop.f32.mrf.mxu1 }
 0x7ed   : > { %1960 = vst [vmem:[%s3460_s24 + $0x38] sm:$0xff] %v1918_v10  ;;  %v1910_v14 = vadd.f32 %v2173_v1, %v1909_v11 }
 0x7ee   : > { %v2557_v17 = vpop.f32.mrf.mxu1 }
 0x7ef   : > { %1958 = vst [vmem:[%s3460_s24 + $0x28] sm:$0xff] %v1910_v14  ;;  %v1931_v19 = vadd.f32 %v2557_v17, %v2173_v1 }
 0x7f0   : > { %v1922_v20 = vpop.f32.mrf.mxu1 }
 0x7f1   : > { %1963 = vst [vmem:[%s3460_s24 + $0x50] sm:$0xff] %v1931_v19  ;;  %v1923_v36 = vadd.f32 %v2173_v1, %v1922_v20 }
 0x7f2   : > { %v2558_v16 = vpop.f32.mrf.mxu1 }
 0x7f3   : > { %1961 = vst [vmem:[%s3460_s24 + $0x40] sm:$0xff] %v1923_v36  ;;  %v1934_v43 = vadd.f32 %v2558_v16, %v2173_v1 }
 0x7f4   : > { %v1925_v22 = vpop.f32.mrf.mxu1 }
 0x7f5   : > { %1964 = vst [vmem:[%s3460_s24 + $0x58] sm:$0xff] %v1934_v43  ;;  %v1926_v24 = vadd.f32 %v2173_v1, %v1925_v22 }
 0x7f6   : > { %v2561_v26 = vpop.f32.mrf.mxu1 }
 0x7f7   : > { %1962 = vst [vmem:[%s3460_s24 + $0x48] sm:$0xff] %v1926_v24  ;;  %v1947_v27 = vadd.f32 %v2561_v26, %v2173_v1 }
 0x7f8   : > { %v1938_v37 = vpop.f32.mrf.mxu1 }
 0x7f9   : > { %1967 = vst [vmem:[%s3460_s24 + $0x70] sm:$0xff] %v1947_v27  ;;  %v1939_v28 = vadd.f32 %v2173_v1, %v1938_v37 }
 0x7fa   : > { %v2562_v54 = vpop.f32.mrf.mxu1 }
 0x7fb   : > { %1965 = vst [vmem:[%s3460_s24 + $0x60] sm:$0xff] %v1939_v28  ;;  %v1950_v32 = vadd.f32 %v2562_v54, %v2173_v1 }
 0x7fc   : > { %v1941_v29 = vpop.f32.mrf.mxu1 }
 0x7fd   : > { %1968 = vst [vmem:[%s3460_s24 + $0x78] sm:$0xff] %v1950_v32  ;;  %v1942_v38 = vadd.f32 %v2173_v1, %v1941_v29 }
 0x7ff   : > { %1966 = vst [vmem:[%s3460_s24 + $0x68] sm:$0xff] %v1942_v38 }
 0x800 PF: > { %s3542_s28 = sld [smem:[#allocation18_spill]]  ;;  %s3545_s25 = smov %s2900_s26 }
 0x801   : > { %s3543_s29 = sld [smem:[#allocation17_spill]] }
 0x802   : > { %s3544_s27 = sld [smem:[#allocation19_spill]] }
 0x806   : > { %p28_p0 = scmp.ge.s32.totalorder %s3542_s28, 4  }
 0x807   : > { %s3546_s26 = smov %s3543_s29 }
 0x808   :  { %30 = sbr.rel (!%p28_p0) target bundleno = 14 (0xe), region = 141 }
 0x80d   :  { %1990 = vsyncpa [#allocation3], 1 }
 0x80e   :  { %1992 = vsyncpa [#allocation3 + $0x1], 1 }
 0x80f   :  { %1993 = vsyncpa [#allocation5], 1 }
 0x810   :  { %1995 = vsyncpa [#allocation5 + $0x1], 1 }
 0x811   :  { %1996 = vsyncpa [#allocation8], 1 }
 0x812   :  { %1997 = vsyncpa [#allocation11], 1 }

</bundles_post_ra>
